<compile_context>
chip_gen: v5e
topology: v5e:2x2
jax: 0.10.0
libtpu: 0.0.40
codegen_flags: <defaults>
</compile_context>

<pallas_src>
import jax
import jax.numpy as jnp
from jax.experimental import pallas as pl
from jax.experimental.pallas import tpu as pltpu

BN_EPS = 1e-5


def _round_up(n, m):
    return ((n + m - 1) // m) * m


def _mlp_kernel(x_ref, w1_ref, bn1_ref, bn2_ref, b3_ref,   # VMEM inputs
                w2_hbm, w3_hbm,                             # raw HBM refs (pl.ANY)
                o_ref,                                      # output
                w2_buf, w3_buf, sems):                      # scratch
    # Kick off w2 / w3 HBM->VMEM DMAs immediately; they hide behind fc1 + BN1.
    cp_w2 = pltpu.make_async_copy(w2_hbm, w2_buf, sems.at[0])
    cp_w3 = pltpu.make_async_copy(w3_hbm, w3_buf, sems.at[1])
    cp_w2.start()
    cp_w3.start()

    inv_b = 1.0 / x_ref.shape[0]                            # static Python float

    def bn_relu(h, bn_ref):
        # torch train-mode BN: batch stats, biased variance, two-pass for stability
        mu = jnp.sum(h, axis=0, keepdims=True) * inv_b
        d = h - mu
        var = jnp.sum(d * d, axis=0, keepdims=True) * inv_b
        gamma = bn_ref[0:1, :]
        beta = bn_ref[1:2, :]
        scale = gamma * jax.lax.rsqrt(var + BN_EPS)
        return jnp.maximum(d * scale + beta, 0.0)

    # ---- fc1 (bias cancels in train-mode BN) + bn1 + relu --------------------
    x16 = x_ref[...].astype(jnp.bfloat16)
    h = jnp.dot(x16, w1_ref[...], preferred_element_type=jnp.float32)
    h = bn_relu(h, bn1_ref)
    # dropout: identity (see TODO above)

    # ---- fc2 (bias cancels in train-mode BN) + bn2 + relu --------------------
    cp_w2.wait()
    h = jnp.dot(h.astype(jnp.bfloat16), w2_buf[...],
                preferred_element_type=jnp.float32)
    h = bn_relu(h, bn2_ref)
    # dropout: identity (see TODO above)

    # ---- fc3 (lane-dense padded output) --------------------------------------
    cp_w3.wait()
    out = jnp.dot(h.astype(jnp.bfloat16), w3_buf[...],
                  preferred_element_type=jnp.float32) + b3_ref[...]
    o_ref[...] = out.astype(o_ref.dtype)


def model_mlp_forward(x, packed, num_classes):
    """x: (B, 1, input_length) or (B, input_length). Returns (B, num_classes)."""
    if x.ndim == 3:
        x = jnp.squeeze(x, axis=1)                           # safe for B == 1
    B = x.shape[0]
    out_pad = packed["w3"].shape[1]

    vmem = pl.BlockSpec(memory_space=pltpu.MemorySpace.VMEM)
    hbm = pl.BlockSpec(memory_space=pl.ANY)

    out = pl.pallas_call(
        _mlp_kernel,
        out_shape=jax.ShapeDtypeStruct((B, out_pad), jnp.float32),
        in_specs=[vmem, vmem, vmem, vmem, vmem, hbm, hbm],
        out_specs=vmem,
        scratch_shapes=[
            pltpu.VMEM(packed["w2"].shape, packed["w2"].dtype),
            pltpu.VMEM(packed["w3"].shape, packed["w3"].dtype),
            pltpu.SemaphoreType.DMA((2,)),
        ],
    )(x,
      packed["w1"], packed["bn1"], packed["bn2"], packed["b3"],
      packed["w2"], packed["w3"])
    return out[:, :num_classes]


def init_params(key, input_length, num_classes):
    """Deterministic synthetic parameters matching the module's shapes.

    Weights are stored in bfloat16 (the dtype the kernel consumes); biases and
    BN affine params stay f32. These unpadded values feed the pure-JAX reference.
    """
    ks = jax.random.split(key, 6)

    def lin(kw, kb, fan_in, fan_out):
        bound = float(fan_in) ** -0.5
        w = jax.random.uniform(kw, (fan_in, fan_out), jnp.float32, -bound, bound)
        b = jax.random.uniform(kb, (1, fan_out), jnp.float32, -bound, bound)
        return w.astype(jnp.bfloat16), b

    w1, b1 = lin(ks[0], ks[1], input_length, 500)
    w2, b2 = lin(ks[2], ks[3], 500, 256)
    w3, b3 = lin(ks[4], ks[5], 256, num_classes)
    return dict(
        w1=w1, b1=b1, g1=jnp.ones((1, 500), jnp.float32), be1=jnp.zeros((1, 500), jnp.float32),
        w2=w2, b2=b2, g2=jnp.ones((1, 256), jnp.float32), be2=jnp.zeros((1, 256), jnp.float32),
        w3=w3, b3=b3,
    )


def pack_params(p):
    """Zero-pad to lane-dense widths (hidden 500->512, classes->128) and
    coalesce each BN's (gamma, beta) into one (2, W) f32 array."""
    h1 = p["w1"].shape[1]
    h1p = _round_up(h1, 128)                                 # 500 -> 512
    ncls = p["w3"].shape[1]
    nclsp = _round_up(ncls, 128)                             # 10  -> 128

    def pad_cols(a, new_cols):
        return jnp.pad(a, ((0, 0), (0, new_cols - a.shape[1])))

    def pad_rows(a, new_rows):
        return jnp.pad(a, ((0, new_rows - a.shape[0]), (0, 0)))

    bn1 = jnp.concatenate([pad_cols(p["g1"], h1p), pad_cols(p["be1"], h1p)], axis=0)
    bn2 = jnp.concatenate([p["g2"], p["be2"]], axis=0)

    return dict(
        w1=pad_cols(p["w1"], h1p),                           # (L, 512)   bf16
        bn1=bn1,                                             # (2, 512)   f32
        w2=pad_rows(p["w2"], h1p),                           # (512, 256) bf16
        bn2=bn2,                                             # (2, 256)   f32
        w3=pad_cols(p["w3"], nclsp),                         # (256, 128) bf16
        b3=pad_cols(p["b3"], nclsp),                         # (1, 128)   f32
    )


def _reference(x, p):
    """Pure-JAX f32 reference of the torch forward (train-mode BN, identity dropout)."""
    if x.ndim == 3:
        x = jnp.squeeze(x, axis=1)

    def bn(h, g, b):
        mu = jnp.mean(h, axis=0, keepdims=True)
        var = jnp.mean((h - mu) ** 2, axis=0, keepdims=True)  # biased, as torch
        return (h - mu) * jax.lax.rsqrt(var + BN_EPS) * g + b

    h = jnp.maximum(bn(x @ p["w1"].astype(jnp.float32) + p["b1"], p["g1"], p["be1"]), 0.0)
    h = jnp.maximum(bn(h @ p["w2"].astype(jnp.float32) + p["b2"], p["g2"], p["be2"]), 0.0)
    return h @ p["w3"].astype(jnp.float32) + p["b3"]


if __name__ == "__main__":
    input_length, num_classes, batch = 256, 10, 8

    key = jax.random.PRNGKey(0)
    kx, kp = jax.random.split(key)
    x = jax.random.normal(kx, (batch, 1, input_length), jnp.float32)
    params = init_params(kp, input_length, num_classes)
    packed = pack_params(params)

    out = model_mlp_forward(x, packed, num_classes)
    out = jax.block_until_ready(out)

    ref = _reference(x, params)
    assert out.shape == (batch, num_classes)
    # bf16 activation casts on the MXU path add ~1e-2-level absolute error vs the
    # f32 reference (accumulation is still f32); tolerance loosened accordingly.
    assert jnp.allclose(out, ref, atol=5e-2, rtol=5e-2), "mismatch vs JAX reference"
    print("KERNEL_OK")
</pallas_src>

<mosaic_0001>
module attributes {stable_mosaic.version = 11 : i64} {
  func.func @_mlp_kernel(%arg0: memref<8x256xf32, #tpu.memory_space<vmem>>, %arg1: memref<256x512xbf16, #tpu.memory_space<vmem>>, %arg2: memref<2x512xf32, #tpu.memory_space<vmem>>, %arg3: memref<2x256xf32, #tpu.memory_space<vmem>>, %arg4: memref<1x128xf32, #tpu.memory_space<vmem>>, %arg5: memref<512x256xbf16, #tpu.memory_space<any>>, %arg6: memref<256x128xbf16, #tpu.memory_space<any>>, %arg7: memref<8x128xf32, #tpu.memory_space<vmem>>, %arg8: memref<512x256xbf16, #tpu.memory_space<vmem>>, %arg9: memref<256x128xbf16, #tpu.memory_space<vmem>>, %arg10: memref<2x!tpu.dma_semaphore, #tpu.memory_space<semaphore_mem>>) attributes {dimension_semantics = [], scalar_prefetch = 0 : i64, scratch_operands = 3 : i64, tpu.core_type = #tpu.core_type<tc>} {
    %c0_i32 = arith.constant 0 : i32
    %0 = tpu.memref_slice %arg10[%c0_i32] : memref<2x!tpu.dma_semaphore, #tpu.memory_space<semaphore_mem>> -> memref<1x!tpu.dma_semaphore, #tpu.memory_space<semaphore_mem>>
    %1 = tpu.memref_squeeze %0 : memref<1x!tpu.dma_semaphore, #tpu.memory_space<semaphore_mem>> -> memref<!tpu.dma_semaphore, #tpu.memory_space<semaphore_mem>>
    tpu.enqueue_dma source(%arg5 : memref<512x256xbf16, #tpu.memory_space<any>>) target(%arg8 : memref<512x256xbf16, #tpu.memory_space<vmem>>) target_semaphore(%1 : memref<!tpu.dma_semaphore, #tpu.memory_space<semaphore_mem>>)
    %c1_i32 = arith.constant 1 : i32
    %2 = tpu.memref_slice %arg10[%c1_i32] : memref<2x!tpu.dma_semaphore, #tpu.memory_space<semaphore_mem>> -> memref<1x!tpu.dma_semaphore, #tpu.memory_space<semaphore_mem>>
    %3 = tpu.memref_squeeze %2 : memref<1x!tpu.dma_semaphore, #tpu.memory_space<semaphore_mem>> -> memref<!tpu.dma_semaphore, #tpu.memory_space<semaphore_mem>>
    tpu.enqueue_dma source(%arg6 : memref<256x128xbf16, #tpu.memory_space<any>>) target(%arg9 : memref<256x128xbf16, #tpu.memory_space<vmem>>) target_semaphore(%3 : memref<!tpu.dma_semaphore, #tpu.memory_space<semaphore_mem>>)
    %c0 = arith.constant 0 : index
    %c0_0 = arith.constant 0 : index
    %4 = vector.load %arg0[%c0, %c0_0] : memref<8x256xf32, #tpu.memory_space<vmem>>, vector<8x256xf32>
    %5 = arith.truncf %4 : vector<8x256xf32> to vector<8x256xbf16>
    %c0_1 = arith.constant 0 : index
    %c0_2 = arith.constant 0 : index
    %6 = vector.load %arg1[%c0_1, %c0_2] : memref<256x512xbf16, #tpu.memory_space<vmem>>, vector<256x512xbf16>
    %cst = arith.constant dense<0.000000e+00> : vector<8x512xf32>
    %7 = tpu.matmul %5, %6, %cst {dimension_numbers = #tpu.dot_dimension_numbers<[1], [0], [0], [1], [0, 0, 1, 1], [], []>} : vector<8x256xbf16>, vector<256x512xbf16>, vector<8x512xf32> -> vector<8x512xf32>
    %cst_3 = arith.constant dense<0.000000e+00> : vector<512xf32>
    %8 = vector.multi_reduction <add>, %7, %cst_3 [0] : vector<8x512xf32> to vector<512xf32>
    %9 = vector.shape_cast %8 : vector<512xf32> to vector<1x512xf32>
    %cst_4 = arith.constant 1.250000e-01 : f32
    %10 = vector.broadcast %cst_4 : f32 to vector<1x512xf32>
    %11 = arith.mulf %9, %10 : vector<1x512xf32>
    %12 = vector.broadcast %11 : vector<1x512xf32> to vector<8x512xf32>
    %13 = arith.subf %7, %12 : vector<8x512xf32>
    %14 = arith.mulf %13, %13 : vector<8x512xf32>
    %cst_5 = arith.constant dense<0.000000e+00> : vector<512xf32>
    %15 = vector.multi_reduction <add>, %14, %cst_5 [0] : vector<8x512xf32> to vector<512xf32>
    %16 = vector.shape_cast %15 : vector<512xf32> to vector<1x512xf32>
    %cst_6 = arith.constant 1.250000e-01 : f32
    %17 = vector.broadcast %cst_6 : f32 to vector<1x512xf32>
    %18 = arith.mulf %16, %17 : vector<1x512xf32>
    %c0_7 = arith.constant 0 : index
    %c0_8 = arith.constant 0 : index
    %19 = vector.load %arg2[%c0_7, %c0_8] : memref<2x512xf32, #tpu.memory_space<vmem>>, vector<1x512xf32>
    %c1 = arith.constant 1 : index
    %c0_9 = arith.constant 0 : index
    %20 = vector.load %arg2[%c1, %c0_9] : memref<2x512xf32, #tpu.memory_space<vmem>>, vector<1x512xf32>
    %cst_10 = arith.constant 9.99999974E-6 : f32
    %21 = vector.broadcast %cst_10 : f32 to vector<1x512xf32>
    %22 = arith.addf %18, %21 : vector<1x512xf32>
    %23 = math.rsqrt %22 : vector<1x512xf32>
    %24 = arith.mulf %19, %23 : vector<1x512xf32>
    %25 = vector.broadcast %24 : vector<1x512xf32> to vector<8x512xf32>
    %26 = arith.mulf %13, %25 : vector<8x512xf32>
    %27 = vector.broadcast %20 : vector<1x512xf32> to vector<8x512xf32>
    %28 = arith.addf %26, %27 : vector<8x512xf32>
    %cst_11 = arith.constant 0.000000e+00 : f32
    %29 = vector.broadcast %cst_11 : f32 to vector<8x512xf32>
    %30 = arith.maximumf %28, %29 : vector<8x512xf32>
    %c0_i32_12 = arith.constant 0 : i32
    %31 = tpu.memref_slice %arg10[%c0_i32_12] : memref<2x!tpu.dma_semaphore, #tpu.memory_space<semaphore_mem>> -> memref<1x!tpu.dma_semaphore, #tpu.memory_space<semaphore_mem>>
    %32 = tpu.memref_squeeze %31 : memref<1x!tpu.dma_semaphore, #tpu.memory_space<semaphore_mem>> -> memref<!tpu.dma_semaphore, #tpu.memory_space<semaphore_mem>>
    tpu.wait_dma2 semaphore(%32 : memref<!tpu.dma_semaphore, #tpu.memory_space<semaphore_mem>>) src(%arg5 : memref<512x256xbf16, #tpu.memory_space<any>>) dst(%arg8 : memref<512x256xbf16, #tpu.memory_space<vmem>>)
    %33 = arith.truncf %30 : vector<8x512xf32> to vector<8x512xbf16>
    %c0_13 = arith.constant 0 : index
    %c0_14 = arith.constant 0 : index
    %34 = vector.load %arg8[%c0_13, %c0_14] : memref<512x256xbf16, #tpu.memory_space<vmem>>, vector<512x256xbf16>
    %cst_15 = arith.constant dense<0.000000e+00> : vector<8x256xf32>
    %35 = tpu.matmul %33, %34, %cst_15 {dimension_numbers = #tpu.dot_dimension_numbers<[1], [0], [0], [1], [0, 0, 1, 1], [], []>} : vector<8x512xbf16>, vector<512x256xbf16>, vector<8x256xf32> -> vector<8x256xf32>
    %cst_16 = arith.constant dense<0.000000e+00> : vector<256xf32>
    %36 = vector.multi_reduction <add>, %35, %cst_16 [0] : vector<8x256xf32> to vector<256xf32>
    %37 = vector.shape_cast %36 : vector<256xf32> to vector<1x256xf32>
    %cst_17 = arith.constant 1.250000e-01 : f32
    %38 = vector.broadcast %cst_17 : f32 to vector<1x256xf32>
    %39 = arith.mulf %37, %38 : vector<1x256xf32>
    %40 = vector.broadcast %39 : vector<1x256xf32> to vector<8x256xf32>
    %41 = arith.subf %35, %40 : vector<8x256xf32>
    %42 = arith.mulf %41, %41 : vector<8x256xf32>
    %cst_18 = arith.constant dense<0.000000e+00> : vector<256xf32>
    %43 = vector.multi_reduction <add>, %42, %cst_18 [0] : vector<8x256xf32> to vector<256xf32>
    %44 = vector.shape_cast %43 : vector<256xf32> to vector<1x256xf32>
    %cst_19 = arith.constant 1.250000e-01 : f32
    %45 = vector.broadcast %cst_19 : f32 to vector<1x256xf32>
    %46 = arith.mulf %44, %45 : vector<1x256xf32>
    %c0_20 = arith.constant 0 : index
    %c0_21 = arith.constant 0 : index
    %47 = vector.load %arg3[%c0_20, %c0_21] : memref<2x256xf32, #tpu.memory_space<vmem>>, vector<1x256xf32>
    %c1_22 = arith.constant 1 : index
    %c0_23 = arith.constant 0 : index
    %48 = vector.load %arg3[%c1_22, %c0_23] : memref<2x256xf32, #tpu.memory_space<vmem>>, vector<1x256xf32>
    %cst_24 = arith.constant 9.99999974E-6 : f32
    %49 = vector.broadcast %cst_24 : f32 to vector<1x256xf32>
    %50 = arith.addf %46, %49 : vector<1x256xf32>
    %51 = math.rsqrt %50 : vector<1x256xf32>
    %52 = arith.mulf %47, %51 : vector<1x256xf32>
    %53 = vector.broadcast %52 : vector<1x256xf32> to vector<8x256xf32>
    %54 = arith.mulf %41, %53 : vector<8x256xf32>
    %55 = vector.broadcast %48 : vector<1x256xf32> to vector<8x256xf32>
    %56 = arith.addf %54, %55 : vector<8x256xf32>
    %cst_25 = arith.constant 0.000000e+00 : f32
    %57 = vector.broadcast %cst_25 : f32 to vector<8x256xf32>
    %58 = arith.maximumf %56, %57 : vector<8x256xf32>
    %c1_i32_26 = arith.constant 1 : i32
    %59 = tpu.memref_slice %arg10[%c1_i32_26] : memref<2x!tpu.dma_semaphore, #tpu.memory_space<semaphore_mem>> -> memref<1x!tpu.dma_semaphore, #tpu.memory_space<semaphore_mem>>
    %60 = tpu.memref_squeeze %59 : memref<1x!tpu.dma_semaphore, #tpu.memory_space<semaphore_mem>> -> memref<!tpu.dma_semaphore, #tpu.memory_space<semaphore_mem>>
    tpu.wait_dma2 semaphore(%60 : memref<!tpu.dma_semaphore, #tpu.memory_space<semaphore_mem>>) src(%arg6 : memref<256x128xbf16, #tpu.memory_space<any>>) dst(%arg9 : memref<256x128xbf16, #tpu.memory_space<vmem>>)
    %61 = arith.truncf %58 : vector<8x256xf32> to vector<8x256xbf16>
    %c0_27 = arith.constant 0 : index
    %c0_28 = arith.constant 0 : index
    %62 = vector.load %arg9[%c0_27, %c0_28] : memref<256x128xbf16, #tpu.memory_space<vmem>>, vector<256x128xbf16>
    %cst_29 = arith.constant dense<0.000000e+00> : vector<8x128xf32>
    %63 = tpu.matmul %61, %62, %cst_29 {dimension_numbers = #tpu.dot_dimension_numbers<[1], [0], [0], [1], [0, 0, 1, 1], [], []>} : vector<8x256xbf16>, vector<256x128xbf16>, vector<8x128xf32> -> vector<8x128xf32>
    %c0_30 = arith.constant 0 : index
    %c0_31 = arith.constant 0 : index
    %64 = vector.load %arg4[%c0_30, %c0_31] : memref<1x128xf32, #tpu.memory_space<vmem>>, vector<1x128xf32>
    %65 = vector.broadcast %64 : vector<1x128xf32> to vector<8x128xf32>
    %66 = arith.addf %63, %65 : vector<8x128xf32>
    %c0_32 = arith.constant 0 : index
    %c0_33 = arith.constant 0 : index
    %67 = vector.load %arg7[%c0_32, %c0_33] : memref<8x128xf32, #tpu.memory_space<vmem>>, vector<8x128xf32>
    tpu.vector_store %arg7[%c0_32, %c0_33], %66 {strides = array<i32>} : memref<8x128xf32, #tpu.memory_space<vmem>>, vector<8x128xf32>,
    return
  }
}

</mosaic_0001>

<bundles_post_ra>
// kernel: tpu_custom_call.1
= control target key start
LH: loop header
LB: loop body
LE: loop exit
PB: predicated region body
PF: predicated region fallthrough
CT: control target
= control target key end

     0   :  { %12 = vsyncpa [#allocation6], 0  ;;  %s2603_s0 = inlined_call_operand.hbm [shape: f32[8,256], index: 0, kind: input, shape index: {}]   ;;  %s2604_s1 = inlined_call_operand.hbm [shape: bf16[256,512], index: 1, kind: input, shape index: {}]   ;;  %s2605_s2 = inlined_call_operand.hbm [shape: f32[2,512], index: 2, kind: input, shape index: {}]   ;;  %s2606_s3 = inlined_call_operand.hbm [shape: f32[2,256], index: 3, kind: input, shape index: {}]   ;;  %s2607_s4 = inlined_call_operand.vmem [shape: f32[1,128], index: 4, kind: input, shape index: {}]   ;;  %s2608_s5 = inlined_call_operand.hbm [shape: bf16[512,256], index: 5, kind: input, shape index: {}]   ;;  %s2609_s6 = inlined_call_operand.hbm [shape: bf16[256,128], index: 6, kind: input, shape index: {}]   ;;  %s2610_s7 = inlined_call_operand.hbm [shape: f32[8,128], index: 7, kind: output, shape index: {}]  }
   0x1   :  { %13 = vsyncpa [#allocation9], 0 }
   0x2   :  { %14 = vsyncpa [#allocation12], 0  ;;  %s31_s26 = sshll.u32 %s2604_s1, 4  ;;  %s32_s26 = int_to_ptr.hbm [resolvable:$true] %s31_s26 }
   0x3   :  { %15 = vsyncpa [#allocation7], 0  ;;  %s2451_s27 = smov [#allocation8]   ;;  %s21_s8 = sshll.u32 %s2603_s0, 4  ;;  %s22_s8 = int_to_ptr.hbm [resolvable:$true] %s21_s8 }
   0x4   :  { %s33_s28 = sshll.u32 %s2451_s27, 4  ;;  %s2452_s9 = smov 256   ;;  %s34_s28 = int_to_ptr.vmem [resolvable:$true] %s33_s28 }
   0x5   :  { %s2453_s10 = smov 16   ;;  %s2454_s11 = smov [#allocation5]  }
   0x6   :  { %39 = dma.hbm_to_vmem [thread:$0]  %s32_s26, 8192, %s34_s28, [#allocation9], %s2452_s9, %s2452_s9, %s2453_s10  }
   0x7   :  { %s23_s12 = sshll.u32 %s2454_s11, 4  ;;  %s45_s15 = sshll.u32 %s2605_s2, 4  ;;  %s24_s12 = int_to_ptr.vmem [resolvable:$true] %s23_s12  ;;  %s46_s15 = int_to_ptr.hbm [resolvable:$true] %s45_s15 }
   0x8   :  { %26 = dma.hbm_to_vmem [thread:$0]  %s22_s8, 256, %s24_s12, [#allocation6]  }
   0x9   :  { %s56_s17 = sshll.u32 %s2606_s3, 4  ;;  %s2455_s18 = smov [#allocation10]   ;;  %s57_s17 = int_to_ptr.hbm [resolvable:$true] %s56_s17 }
   0xa   :  { %s47_s19 = sshll.u32 %s2455_s18, 4  ;;  %s2456_s0 = smov [#allocation11]   ;;  %s48_s19 = int_to_ptr.vmem [resolvable:$true] %s47_s19 }
   0xb   :  { %50 = dma.hbm_to_vmem [thread:$0]  %s46_s15, 128, %s48_s19, [#allocation9]  }
   0xc   :  { %s58_s20 = sshll.u32 %s2456_s0, 4  ;;  %s59_s20 = int_to_ptr.vmem [resolvable:$true] %s58_s20 }
   0xd   :  { %61 = dma.hbm_to_vmem [thread:$0]  %s57_s17, 64, %s59_s20, [#allocation12]  }
   0xe   :  { %2439 = dma.done.wait [#allocation6], 256  }
   0xf   :  { %2440 = vsyncadd [#allocation6], 4294967040 }
  0x10   :  { %2441 = dma.done.wait [#allocation9], 8320  }
  0x11   :  { %2442 = vsyncadd [#allocation9], 4294958976 }
  0x12   :  { %2443 = dma.done.wait [#allocation12], 64  }
  0x13   :  { %2444 = vsyncadd [#allocation12], 4294967232  ;;  %v1641_v0 = vld [vmem:[#allocation8 + $0xe0] sm:$0xf]  ;;  %v2135_v1 = vld [vmem:[#allocation8 + $0xec] sm:$0xf0] }
  0x14   :  { %v1769_v2 = vld [vmem:[#allocation8 + $0x1e0] sm:$0xf]  ;;  %v1642_v3 = vor.u32 %v2135_v1, %v1641_v0  ;;  %v2167_v4 = vld [vmem:[#allocation8 + $0x1ec] sm:$0xf0]  ;;  %v2133_v5 = vld [vmem:[#allocation8 + $0xe4] sm:$0xf] }
  0x15   :  { %v1643_v6 = vld [vmem:[#allocation8 + $0xf0] sm:$0xf0]  ;;  %v1770_v7 = vor.u32 %v2167_v4, %v1769_v2  ;;  %v2165_v9 = vld [vmem:[#allocation8 + $0x1e4] sm:$0xf]  ;;  %v1625_v11 = vld [vmem:[#allocation8 + $0xc0] sm:$0xf] }
  0x16   :  { %v1646_v8 = vor.u32 %v2133_v5, %v1643_v6  ;;  %v1771_v10 = vld [vmem:[#allocation8 + $0x1f0] sm:$0xf0]  ;;  %495 = vmatpush.bf16.msra.mxu0 %v1642_v3  ;;  %v2131_v13 = vld [vmem:[#allocation8 + $0xcc] sm:$0xf0]  ;;  %v1753_v14 = vld [vmem:[#allocation8 + $0x1c0] sm:$0xf] }
  0x17   :  { %v1774_v12 = vor.u32 %v2165_v9, %v1771_v10  ;;  %v2163_v15 = vld [vmem:[#allocation8 + $0x1cc] sm:$0xf0]  ;;  %508 = vmatpush.bf16.msra.mxu1 %v1770_v7  ;;  %v1626_v16 = vor.u32 %v2131_v13, %v1625_v11  ;;  %v2129_v18 = vld [vmem:[#allocation8 + $0xc4] sm:$0xf]  ;;  %v1627_v19 = vld [vmem:[#allocation8 + $0xd0] sm:$0xf0] }
  0x18   :  { %521 = vmatpush.bf16.msra.mxu2 %v1646_v8  ;;  %v1754_v17 = vor.u32 %v2163_v15, %v1753_v14  ;;  %v2161_v20 = vld [vmem:[#allocation8 + $0x1c4] sm:$0xf]  ;;  %v1630_v21 = vor.u32 %v2129_v18, %v1627_v19  ;;  %v1755_v22 = vld [vmem:[#allocation8 + $0x1d0] sm:$0xf0]  ;;  %v1609_v23 = vld [vmem:[#allocation8 + $0xa0] sm:$0xf] }
  0x19   :  { %534 = vmatpush.bf16.msra.mxu3 %v1774_v12  ;;  %v2127_v24 = vld [vmem:[#allocation8 + $0xac] sm:$0xf0]  ;;  %v1758_v25 = vor.u32 %v2161_v20, %v1755_v22  ;;  %v1737_v26 = vld [vmem:[#allocation8 + $0x1a0] sm:$0xf]  ;;  %v2125_v28 = vld [vmem:[#allocation8 + $0xa4] sm:$0xf] }
  0x1a   :  { %v2159_v27 = vld [vmem:[#allocation8 + $0x1ac] sm:$0xf0]  ;;  %496 = vmatpush.bf16.msra.mxu0 %v1626_v16  ;;  %v1610_v29 = vor.u32 %v2127_v24, %v1609_v23  ;;  %v1611_v30 = vld [vmem:[#allocation8 + $0xb0] sm:$0xf0]  ;;  %v2157_v31 = vld [vmem:[#allocation8 + $0x1a4] sm:$0xf] }
  0x1b   :  { %v1739_v32 = vld [vmem:[#allocation8 + $0x1b0] sm:$0xf0]  ;;  %509 = vmatpush.bf16.msra.mxu1 %v1754_v17  ;;  %v1738_v33 = vor.u32 %v2159_v27, %v1737_v26  ;;  %v1614_v34 = vor.u32 %v2125_v28, %v1611_v30  ;;  %v1593_v35 = vld [vmem:[#allocation8 + $0x80] sm:$0xf]  ;;  %v2123_v36 = vld [vmem:[#allocation8 + $0x8c] sm:$0xf0] }
  0x1c   :  { %522 = vmatpush.bf16.msra.mxu2 %v1630_v21  ;;  %v1721_v37 = vld [vmem:[#allocation8 + $0x180] sm:$0xf]  ;;  %v1742_v38 = vor.u32 %v2157_v31, %v1739_v32  ;;  %v2155_v39 = vld [vmem:[#allocation8 + $0x18c] sm:$0xf0]  ;;  %v2121_v40 = vld [vmem:[#allocation8 + $0x84] sm:$0xf]  ;;  %v1594_v44 = vor.u32 %v2123_v36, %v1593_v35 }
  0x1d   :  { %535 = vmatpush.bf16.msra.mxu3 %v1758_v25  ;;  %v1595_v41 = vld [vmem:[#allocation8 + $0x90] sm:$0xf0]  ;;  %v2153_v42 = vld [vmem:[#allocation8 + $0x184] sm:$0xf]  ;;  %v1722_v45 = vor.u32 %v2155_v39, %v1721_v37  ;;  %v1577_v47 = vld [vmem:[#allocation8 + $0x60] sm:$0xf] }
  0x1e   :  { %v1723_v43 = vld [vmem:[#allocation8 + $0x190] sm:$0xf0]  ;;  %497 = vmatpush.bf16.msra.mxu0 %v1610_v29  ;;  %v1598_v46 = vor.u32 %v2121_v40, %v1595_v41  ;;  %v2119_v48 = vld [vmem:[#allocation8 + $0x6c] sm:$0xf0]  ;;  %v1705_v49 = vld [vmem:[#allocation8 + $0x160] sm:$0xf] }
  0x1f   :  { %510 = vmatpush.bf16.msra.mxu1 %v1738_v33  ;;  %v1726_v50 = vor.u32 %v2153_v42, %v1723_v43  ;;  %v2151_v51 = vld [vmem:[#allocation8 + $0x16c] sm:$0xf0]  ;;  %v2117_v52 = vld [vmem:[#allocation8 + $0x64] sm:$0xf]  ;;  %v1579_v53 = vld [vmem:[#allocation8 + $0x70] sm:$0xf0]  ;;  %v1578_v56 = vor.u32 %v2119_v48, %v1577_v47 }
  0x20   :  { %523 = vmatpush.bf16.msra.mxu2 %v1614_v34  ;;  %v2149_v54 = vld [vmem:[#allocation8 + $0x164] sm:$0xf]  ;;  %v1707_v55 = vld [vmem:[#allocation8 + $0x170] sm:$0xf0]  ;;  %v1706_v57 = vor.u32 %v2151_v51, %v1705_v49  ;;  %v1582_v58 = vor.u32 %v2117_v52, %v1579_v53  ;;  %v1561_v59 = vld [vmem:[#allocation8 + $0x40] sm:$0xf] }
  0x21   :  { %536 = vmatpush.bf16.msra.mxu3 %v1742_v38  ;;  %v2115_v60 = vld [vmem:[#allocation8 + $0x4c] sm:$0xf0]  ;;  %v1689_v61 = vld [vmem:[#allocation8 + $0x140] sm:$0xf]  ;;  %v1710_v62 = vor.u32 %v2149_v54, %v1707_v55  ;;  %v2113_v0 = vld [vmem:[#allocation8 + $0x44] sm:$0xf] }
  0x22   :  { %498 = vmatpush.bf16.msra.mxu0 %v1594_v44  ;;  %v2147_v63 = vld [vmem:[#allocation8 + $0x14c] sm:$0xf0]  ;;  %v1563_v1 = vld [vmem:[#allocation8 + $0x50] sm:$0xf0]  ;;  %v2145_v2 = vld [vmem:[#allocation8 + $0x144] sm:$0xf]  ;;  %v1562_v4 = vor.u32 %v2115_v60, %v1561_v59 }
  0x23   :  { %511 = vmatpush.bf16.msra.mxu1 %v1722_v45  ;;  %v1691_v3 = vld [vmem:[#allocation8 + $0x150] sm:$0xf0]  ;;  %v1690_v5 = vor.u32 %v2147_v63, %v1689_v61  ;;  %v1566_v6 = vor.u32 %v2113_v0, %v1563_v1  ;;  %v1545_v7 = vld [vmem:[#allocation8 + $0x20] sm:$0xf]  ;;  %v2111_v8 = vld [vmem:[#allocation8 + $0x2c] sm:$0xf0] }
  0x24   :  { %524 = vmatpush.bf16.msra.mxu2 %v1598_v46  ;;  %v1673_v9 = vld [vmem:[#allocation8 + $0x120] sm:$0xf]  ;;  %v1694_v10 = vor.u32 %v2145_v2, %v1691_v3  ;;  %v2143_v11 = vld [vmem:[#allocation8 + $0x12c] sm:$0xf0]  ;;  %v2109_v12 = vld [vmem:[#allocation8 + $0x24] sm:$0xf]  ;;  %v1546_v16 = vor.u32 %v2111_v8, %v1545_v7 }
  0x25   :  { %537 = vmatpush.bf16.msra.mxu3 %v1726_v50  ;;  %v1547_v13 = vld [vmem:[#allocation8 + $0x30] sm:$0xf0]  ;;  %v2141_v14 = vld [vmem:[#allocation8 + $0x124] sm:$0xf]  ;;  %v1529_v17 = vld [vmem:[#allocation8] sm:$0xf]  ;;  %v1674_v19 = vor.u32 %v2143_v11, %v1673_v9 }
  0x26   :  { %499 = vmatpush.bf16.msra.mxu0 %v1578_v56  ;;  %v1675_v15 = vld [vmem:[#allocation8 + $0x130] sm:$0xf0]  ;;  %v2107_v18 = vld [vmem:[#allocation8 + $0xc] sm:$0xf0]  ;;  %v1550_v20 = vor.u32 %v2109_v12, %v1547_v13  ;;  %v1657_v21 = vld [vmem:[#allocation8 + $0x100] sm:$0xf] }
  0x27   :  { %512 = vmatpush.bf16.msra.mxu1 %v1706_v57  ;;  %v2139_v22 = vld [vmem:[#allocation8 + $0x10c] sm:$0xf0]  ;;  %v2105_v23 = vld [vmem:[#allocation8 + $0x4] sm:$0xf]  ;;  %v1678_v24 = vor.u32 %v2141_v14, %v1675_v15  ;;  %v1531_v25 = vld [vmem:[#allocation8 + $0x10] sm:$0xf0]  ;;  %v1530_v31 = vor.u32 %v2107_v18, %v1529_v17 }
  0x28   :  { %525 = vmatpush.bf16.msra.mxu2 %v1582_v58  ;;  %v2137_v26 = vld [vmem:[#allocation8 + $0x104] sm:$0xf]  ;;  %v1659_v27 = vld [vmem:[#allocation8 + $0x110] sm:$0xf0]  ;;  %v1649_v28 = vld [vmem:[#allocation8 + $0xe8] sm:$0xf]  ;;  %v1658_v35 = vor.u32 %v2139_v22, %v1657_v21  ;;  %v1534_v36 = vor.u32 %v2105_v23, %v1531_v25 }
  0x29   :  { %538 = vmatpush.bf16.msra.mxu3 %v1710_v62  ;;  %v2136_v29 = vld [vmem:[#allocation8 + $0xf4] sm:$0xf0]  ;;  %v1777_v30 = vld [vmem:[#allocation8 + $0x1e8] sm:$0xf]  ;;  %v2134_v33 = vld [vmem:[#allocation8 + $0xec] sm:$0xf]  ;;  %v1662_v40 = vor.u32 %v2137_v26, %v1659_v27 }
  0x2a   :  { %500 = vmatpush.bf16.msra.mxu0 %v1562_v4  ;;  %v2168_v32 = vld [vmem:[#allocation8 + $0x1f4] sm:$0xf0]  ;;  %v1651_v34 = vld [vmem:[#allocation8 + $0xf8] sm:$0xf0]  ;;  %v2166_v37 = vld [vmem:[#allocation8 + $0x1ec] sm:$0xf]  ;;  %v1650_v41 = vor.u32 %v2136_v29, %v1649_v28 }
  0x2b   :  { %513 = vmatpush.bf16.msra.mxu1 %v1690_v5  ;;  %v1779_v38 = vld [vmem:[#allocation8 + $0x1f8] sm:$0xf0]  ;;  %v107_v39 = vld [vmem:[#allocation5] sm:$0xff]  ;;  %v1778_v43 = vor.u32 %v2168_v32, %v1777_v30  ;;  %v1654_v44 = vor.u32 %v2134_v33, %v1651_v34  ;;  %v1633_v45 = vld [vmem:[#allocation8 + $0xc8] sm:$0xf]  ;;  %s87_s21 = sshll.u32 %s2608_s5, 4  ;;  %s88_s21 = int_to_ptr.hbm [resolvable:$true] %s87_s21 }
  0x2c   :  { %526 = vmatpush.bf16.msra.mxu2 %v1566_v6  ;;  %v108_v42 = vld [vmem:[#allocation5 + $0x8] sm:$0xff]  ;;  %v1761_v47 = vld [vmem:[#allocation8 + $0x1c8] sm:$0xf]  ;;  %v1782_v48 = vor.u32 %v2166_v37, %v1779_v38  ;;  %v2512_v49 = vpack.c.bf16 %v107_v39, %v107_v39  ;;  %v2130_v51 = vld [vmem:[#allocation8 + $0xcc] sm:$0xf]  ;;  %s2457_s22 = smov [#allocation2]  }
  0x2d   :  { %539 = vmatpush.bf16.msra.mxu3 %v1694_v10  ;;  %v2132_v46 = vld [vmem:[#allocation8 + $0xd4] sm:$0xf0]  ;;  %v1635_v52 = vld [vmem:[#allocation8 + $0xd8] sm:$0xf0]  ;;  %v2514_v53 = vpack.c.bf16 %v108_v42, %v108_v42  ;;  %v2162_v54 = vld [vmem:[#allocation8 + $0x1cc] sm:$0xf] }
  0x2e   :  { %501 = vmatpush.bf16.msra.mxu0 %v1546_v16  ;;  %v2164_v50 = vld [vmem:[#allocation8 + $0x1d4] sm:$0xf0]  ;;  %v1763_v55 = vld [vmem:[#allocation8 + $0x1d8] sm:$0xf0]  ;;  %v1634_v56 = vor.u32 %v2132_v46, %v1633_v45  ;;  %v1638_v58 = vor.u32 %v2130_v51, %v1635_v52  ;;  %v1617_v59 = vld [vmem:[#allocation8 + $0xa8] sm:$0xf] }
  0x2f   :  { %514 = vmatpush.bf16.msra.mxu1 %v1674_v19  ;;  %v1762_v57 = vor.u32 %v2164_v50, %v1761_v47  ;;  %v2128_v60 = vld [vmem:[#allocation8 + $0xb4] sm:$0xf0]  ;;  %v1745_v61 = vld [vmem:[#allocation8 + $0x1a8] sm:$0xf]  ;;  %v1766_v62 = vor.u32 %v2162_v54, %v1763_v55  ;;  %v2126_v0 = vld [vmem:[#allocation8 + $0xac] sm:$0xf] }
  0x30   :  { %527 = vmatpush.bf16.msra.mxu2 %v1550_v20  ;;  %v2160_v63 = vld [vmem:[#allocation8 + $0x1b4] sm:$0xf0]  ;;  %v1619_v1 = vld [vmem:[#allocation8 + $0xb8] sm:$0xf0]  ;;  %v2158_v2 = vld [vmem:[#allocation8 + $0x1ac] sm:$0xf]  ;;  %v1618_v4 = vor.u32 %v2128_v60, %v1617_v59 }
  0x31   :  { %540 = vmatpush.bf16.msra.mxu3 %v1678_v24  ;;  %v1747_v3 = vld [vmem:[#allocation8 + $0x1b8] sm:$0xf0]  ;;  %v1746_v5 = vor.u32 %v2160_v63, %v1745_v61  ;;  %v1622_v6 = vor.u32 %v2126_v0, %v1619_v1  ;;  %v1601_v7 = vld [vmem:[#allocation8 + $0x88] sm:$0xf]  ;;  %v2124_v8 = vld [vmem:[#allocation8 + $0x94] sm:$0xf0] }
  0x32   :  { %502 = vmatpush.bf16.msra.mxu0 %v1530_v31  ;;  %v1729_v9 = vld [vmem:[#allocation8 + $0x188] sm:$0xf]  ;;  %v1750_v10 = vor.u32 %v2158_v2, %v1747_v3  ;;  %v2156_v11 = vld [vmem:[#allocation8 + $0x194] sm:$0xf0]  ;;  %v2122_v12 = vld [vmem:[#allocation8 + $0x8c] sm:$0xf]  ;;  %v1602_v16 = vor.u32 %v2124_v8, %v1601_v7 }
  0x33   :  { %515 = vmatpush.bf16.msra.mxu1 %v1658_v35  ;;  %v1603_v13 = vld [vmem:[#allocation8 + $0x98] sm:$0xf0]  ;;  %v2154_v14 = vld [vmem:[#allocation8 + $0x18c] sm:$0xf]  ;;  %v1730_v17 = vor.u32 %v2156_v11, %v1729_v9  ;;  %v1585_v19 = vld [vmem:[#allocation8 + $0x68] sm:$0xf] }
  0x34   :  { %528 = vmatpush.bf16.msra.mxu2 %v1534_v36  ;;  %v1731_v15 = vld [vmem:[#allocation8 + $0x198] sm:$0xf0]  ;;  %v1606_v18 = vor.u32 %v2122_v12, %v1603_v13  ;;  %v2120_v20 = vld [vmem:[#allocation8 + $0x74] sm:$0xf0]  ;;  %v1713_v21 = vld [vmem:[#allocation8 + $0x168] sm:$0xf] }
  0x35   :  { %541 = vmatpush.bf16.msra.mxu3 %v1662_v40  ;;  %503 = vmatmul.bf16.vlgmr.msra.gmra.mxu0 %v2512_v49  ;;  %v1734_v22 = vor.u32 %v2154_v14, %v1731_v15  ;;  %v2152_v23 = vld [vmem:[#allocation8 + $0x174] sm:$0xf0]  ;;  %v2118_v24 = vld [vmem:[#allocation8 + $0x6c] sm:$0xf]  ;;  %v1587_v25 = vld [vmem:[#allocation8 + $0x78] sm:$0xf0]  ;;  %v1586_v28 = vor.u32 %v2120_v20, %v1585_v19 }
  0x36   :  { %547 = vmatpush.bf16.msrb.mxu0 %v1650_v41  ;;  %516 = vmatmul.bf16.vlgmr.msra.gmra.mxu1 %v2514_v53  ;;  %v2150_v26 = vld [vmem:[#allocation8 + $0x16c] sm:$0xf]  ;;  %v1715_v27 = vld [vmem:[#allocation8 + $0x178] sm:$0xf0]  ;;  %v1714_v29 = vor.u32 %v2152_v23, %v1713_v21  ;;  %v1590_v30 = vor.u32 %v2118_v24, %v1587_v25  ;;  %v1569_v31 = vld [vmem:[#allocation8 + $0x48] sm:$0xf] }
  0x37   :  { %560 = vmatpush.bf16.msrb.mxu1 %v1778_v43  ;;  %529 = vmatmul.bf16.vlgmr.msra.gmra.mxu2 %v2512_v49  ;;  %v2116_v32 = vld [vmem:[#allocation8 + $0x54] sm:$0xf0]  ;;  %v1697_v33 = vld [vmem:[#allocation8 + $0x148] sm:$0xf]  ;;  %v1718_v34 = vor.u32 %v2150_v26, %v1715_v27  ;;  %v2114_v36 = vld [vmem:[#allocation8 + $0x4c] sm:$0xf] }
  0x38   :  { %573 = vmatpush.bf16.msrb.mxu2 %v1654_v44  ;;  %542 = vmatmul.bf16.vlgmr.msra.gmra.mxu3 %v2514_v53  ;;  %v2148_v35 = vld [vmem:[#allocation8 + $0x154] sm:$0xf0]  ;;  %v1571_v37 = vld [vmem:[#allocation8 + $0x58] sm:$0xf0]  ;;  %v2146_v38 = vld [vmem:[#allocation8 + $0x14c] sm:$0xf]  ;;  %v1570_v40 = vor.u32 %v2116_v32, %v1569_v31 }
  0x39   :  { %586 = vmatpush.bf16.msrb.mxu3 %v1782_v48  ;;  %v1699_v39 = vld [vmem:[#allocation8 + $0x158] sm:$0xf0]  ;;  %v1698_v41 = vor.u32 %v2148_v35, %v1697_v33  ;;  %v1574_v42 = vor.u32 %v2114_v36, %v1571_v37  ;;  %v1553_v43 = vld [vmem:[#allocation8 + $0x28] sm:$0xf]  ;;  %v2112_v44 = vld [vmem:[#allocation8 + $0x34] sm:$0xf0] }
  0x3a   :  { %548 = vmatpush.bf16.msrb.mxu0 %v1634_v56  ;;  %v1681_v45 = vld [vmem:[#allocation8 + $0x128] sm:$0xf]  ;;  %v1702_v46 = vor.u32 %v2146_v38, %v1699_v39  ;;  %v2144_v47 = vld [vmem:[#allocation8 + $0x134] sm:$0xf0]  ;;  %v2110_v48 = vld [vmem:[#allocation8 + $0x2c] sm:$0xf]  ;;  %v1554_v54 = vor.u32 %v2112_v44, %v1553_v43 }
  0x3b   :  { %561 = vmatpush.bf16.msrb.mxu1 %v1762_v57  ;;  %v1555_v50 = vld [vmem:[#allocation8 + $0x38] sm:$0xf0]  ;;  %v2142_v51 = vld [vmem:[#allocation8 + $0x12c] sm:$0xf]  ;;  %v1682_v55 = vor.u32 %v2144_v47, %v1681_v45  ;;  %v1537_v57 = vld [vmem:[#allocation8 + $0x8] sm:$0xf] }
  0x3c   :  { %574 = vmatpush.bf16.msrb.mxu2 %v1638_v58  ;;  %v1683_v52 = vld [vmem:[#allocation8 + $0x138] sm:$0xf0]  ;;  %v1558_v56 = vor.u32 %v2110_v48, %v1555_v50  ;;  %v2108_v58 = vld [vmem:[#allocation8 + $0x14] sm:$0xf0]  ;;  %v1665_v59 = vld [vmem:[#allocation8 + $0x108] sm:$0xf] }
  0x3d   :  { %587 = vmatpush.bf16.msrb.mxu3 %v1766_v62  ;;  %v1686_v60 = vor.u32 %v2142_v51, %v1683_v52  ;;  %v2140_v61 = vld [vmem:[#allocation8 + $0x114] sm:$0xf0]  ;;  %v2106_v62 = vld [vmem:[#allocation8 + $0xc] sm:$0xf]  ;;  %v1539_v63 = vld [vmem:[#allocation8 + $0x18] sm:$0xf0]  ;;  %v1538_v2 = vor.u32 %v2108_v58, %v1537_v57 }
  0x3e   :  { %549 = vmatpush.bf16.msrb.mxu0 %v1618_v4  ;;  %v2138_v0 = vld [vmem:[#allocation8 + $0x10c] sm:$0xf]  ;;  %v1667_v1 = vld [vmem:[#allocation8 + $0x118] sm:$0xf0]  ;;  %v1666_v3 = vor.u32 %v2140_v61, %v1665_v59  ;;  %v1542_v4 = vor.u32 %v2106_v62, %v1539_v63  ;;  %s89_s23 = sshll.u32 %s2457_s22, 4  ;;  %s101_s26 = sshll.u32 %s2609_s6, 4  ;;  %s90_s23 = int_to_ptr.vmem [resolvable:$true] %s89_s23  ;;  %s102_s26 = int_to_ptr.hbm [resolvable:$true] %s101_s26 }
  0x3f   :  { %562 = vmatpush.bf16.msrb.mxu1 %v1746_v5  ;;  %v1670_v5 = vor.u32 %v2138_v0, %v1667_v1  ;;  %92 = dma.hbm_to_vmem [thread:$0]  %s88_s21, 8192, %s90_s23, [#allocation4]  ;;  %vm717_vm11 = vcmask 1040384   ;;  %vm719_vm12 = vcmask 1042434   ;;  %vm721_vm14 = vcmask 1041408  }
  0x40   :  { %575 = vmatpush.bf16.msrb.mxu2 %v1622_v6  ;;  %s2458_s27 = smov [#allocation3]  }
  0x41   :  { %588 = vmatpush.bf16.msrb.mxu3 %v1750_v10  ;;  %s103_s28 = sshll.u32 %s2458_s27, 4  ;;  %s104_s28 = int_to_ptr.vmem [resolvable:$true] %s103_s28 }
  0x42   :  { %550 = vmatpush.bf16.msrb.mxu0 %v1602_v16  ;;  %106 = dma.hbm_to_vmem [thread:$0]  %s102_s26, 2048, %s104_s28, [#allocation4 + $0x1] }
  0x43   :  { %563 = vmatpush.bf16.msrb.mxu1 %v1730_v17 }
  0x44   :  { %576 = vmatpush.bf16.msrb.mxu2 %v1606_v18 }
  0x45   :  { %589 = vmatpush.bf16.msrb.mxu3 %v1734_v22 }
  0x46   :  { %551 = vmatpush.bf16.msrb.mxu0 %v1586_v28 }
  0x47   :  { %564 = vmatpush.bf16.msrb.mxu1 %v1714_v29 }
  0x48   :  { %577 = vmatpush.bf16.msrb.mxu2 %v1590_v30 }
  0x49   :  { %590 = vmatpush.bf16.msrb.mxu3 %v1718_v34 }
  0x4a   :  { %552 = vmatpush.bf16.msrb.mxu0 %v1570_v40 }
  0x4b   :  { %565 = vmatpush.bf16.msrb.mxu1 %v1698_v41 }
  0x4c   :  { %578 = vmatpush.bf16.msrb.mxu2 %v1574_v42 }
  0x4d   :  { %591 = vmatpush.bf16.msrb.mxu3 %v1702_v46 }
  0x4e   :  { %553 = vmatpush.bf16.msrb.mxu0 %v1554_v54 }
  0x4f   :  { %566 = vmatpush.bf16.msrb.mxu1 %v1682_v55 }
  0x50   :  { %579 = vmatpush.bf16.msrb.mxu2 %v1558_v56 }
  0x51   :  { %592 = vmatpush.bf16.msrb.mxu3 %v1686_v60 }
  0x52   :  { %554 = vmatpush.bf16.msrb.mxu0 %v1538_v2 }
  0x53   :  { %567 = vmatpush.bf16.msrb.mxu1 %v1666_v3 }
  0x54   :  { %580 = vmatpush.bf16.msrb.mxu2 %v1542_v4 }
  0x55   :  { %593 = vmatpush.bf16.msrb.mxu3 %v1670_v5  ;;  %555 = vmatmul.bf16.vlgmr.msrb.gmra.mxu0 %v2512_v49 }
  0x56   :  { %568 = vmatmul.bf16.vlgmr.msrb.gmra.mxu1 %v2514_v53 }
  0x57   :  { %581 = vmatmul.bf16.vlgmr.msrb.gmra.mxu2 %v2512_v49 }
  0x58   :  { %594 = vmatmul.bf16.vlgmr.msrb.gmra.mxu3 %v2514_v53 }
  0xb2   :  { %v504_v49 = vpop.f32.mrf.mxu0 }
  0xb3   :  { %v517_v53 = vpop.f32.mrf.mxu1 }
  0xb4   :  { %v518_v6 = vadd.f32 %v517_v53, %v504_v49 }
  0xb6   :  { %v599_v7 = vrot.slane %v518_v6, 4 }
  0xb8   :  { %v600_v8 = vadd.f32 %v599_v7, %v518_v6 }
  0xba   :  { %v530_v9 = vpop.f32.mrf.mxu2  ;;  %v601_v10 = vrot.slane %v600_v8, 2  ;;  %v506_v12 = vpop.f32.mrf.mxu0 }
  0xbb   :  { %v543_v11 = vpop.f32.mrf.mxu3  ;;  %v519_v14 = vpop.f32.mrf.mxu1 }
  0xbc   :  { %v544_v13 = vadd.f32 %v543_v11, %v530_v9  ;;  %v602_v15 = vadd.f32 %v601_v10, %v600_v8 }
  0xbe   :  { %v605_v16 = vrot.slane %v544_v13, 4  ;;  %v603_v17 = vrot.slane %v602_v15, 1 }
  0xc0   :  { %v606_v18 = vadd.f32 %v605_v16, %v544_v13  ;;  %v604_v21 = vadd.f32 %v603_v17, %v602_v15 }
  0xc2   :  { %v607_v19 = vrot.slane %v606_v18, 2  ;;  %v532_v20 = vpop.f32.mrf.mxu2  ;;  %v623_v25 = vmul.f32 0.125, %v604_v21 }
  0xc3   :  { %v545_v22 = vpop.f32.mrf.mxu3 }
  0xc4   :  { %v608_v23 = vadd.f32 %v607_v19, %v606_v18  ;;  %v2530_v28 = vsub.f32 %v518_v6, %v623_v25 }
  0xc6   :  { %v609_v24 = vrot.slane %v608_v23, 1  ;;  %v631_v31 = vmul.f32 %v2530_v28, %v2530_v28 }
  0xc8   :  { %v610_v26 = vadd.f32 %v609_v24, %v608_v23  ;;  %v635_v37 = vrot.slane %v631_v31, 4 }
  0xca   :  { %v624_v27 = vmul.f32 0.125, %v610_v26  ;;  %v636_v41 = vadd.f32 %v635_v37, %v631_v31 }
  0xcc   :  { %v2532_v29 = vsub.f32 %v544_v13, %v624_v27  ;;  %v637_v51 = vrot.slane %v636_v41, 2 }
  0xce   :  { %v632_v30 = vmul.f32 %v2532_v29, %v2532_v29  ;;  %v638_v58 = vadd.f32 %v637_v51, %v636_v41 }
  0xd0   :  { %v641_v32 = vrot.slane %v632_v30, 4  ;;  %v639_v1 = vrot.slane %v638_v58, 1 }
  0xd2   :  { %v556_v33 = vpop.f32.mrf.mxu0  ;;  %v642_v35 = vadd.f32 %v641_v32, %v632_v30  ;;  %v640_v53 = vadd.f32 %v639_v1, %v638_v58 }
  0xd3   :  { %v569_v34 = vpop.f32.mrf.mxu1 }
  0xd4   :  { %v570_v36 = vadd.f32 %v569_v34, %v556_v33  ;;  %v643_v39 = vrot.slane %v642_v35, 2  ;;  %v659_v11 = vmul.f32 0.125, %v640_v53 }
  0xd6   :  { %v611_v38 = vrot.slane %v570_v36, 4  ;;  %v644_v46 = vadd.f32 %v643_v39, %v642_v35  ;;  %v666_v16 = vadd.f32 1e-05, %v659_v11 }
  0xd8   :  { %v612_v40 = vadd.f32 %v611_v38, %v570_v36  ;;  %v645_v55 = vrot.slane %v644_v46, 1  ;;  %vm676_vm10 = vweird.f32 %v666_v16 }
  0xda   :  { %v582_v42 = vpop.f32.mrf.mxu2  ;;  %v613_v43 = vrot.slane %v612_v40, 2  ;;  %v558_v45 = vpop.f32.mrf.mxu0  ;;  %v646_v62 = vadd.f32 %v645_v55, %v644_v46 }
  0xdb   :  { %v595_v44 = vpop.f32.mrf.mxu3  ;;  %v571_v48 = vpop.f32.mrf.mxu1 }
  0xdc   :  { %v596_v47 = vadd.f32 %v595_v44, %v582_v42  ;;  %v614_v50 = vadd.f32 %v613_v43, %v612_v40  ;;  %v660_v4 = vmul.f32 0.125, %v646_v62 }
  0xde   :  { %v617_v52 = vrot.slane %v596_v47, 4  ;;  %v615_v54 = vrot.slane %v614_v50, 1  ;;  %v667_v8 = vadd.f32 1e-05, %v660_v4 }
  0xe0   :  { %v618_v56 = vadd.f32 %v617_v52, %v596_v47  ;;  %v616_v57 = vadd.f32 %v615_v54, %v614_v50  ;;  %2258 = vrsqrt.f32 %v667_v8  ;;  %vm686_vm1 = vweird.f32 %v667_v8 }
  0xe1   :  { %2260 = vrsqrt.f32 %v666_v16 }
  0xe2   :  { %v619_v59 = vrot.slane %v618_v56, 2  ;;  %v584_v60 = vpop.f32.mrf.mxu2  ;;  %v625_v63 = vmul.f32 0.125, %v616_v57 }
  0xe3   :  { %v597_v61 = vpop.f32.mrf.mxu3 }
  0xe4   :  { %v620_v0 = vadd.f32 %v619_v59, %v618_v56  ;;  %v2538_v2 = vsub.f32 %v570_v36, %v625_v63  ;;  %v663_v63 = vld [vmem:[#allocation10] ss:$2 sm:$0xf] }
  0xe6   :  { %v621_v3 = vrot.slane %v620_v0, 1  ;;  %v633_v5 = vmul.f32 %v2538_v2, %v2538_v2  ;;  %v2259_v21 = vpop.eup %2258 }
  0xe7   :  { %v681_v26 = vmul.f32 %v2259_v21, %v667_v8  ;;  %v2261_v30 = vpop.eup %2260  ;;  %vm687_vm0 = vweird.f32 %v2259_v21 }
  0xe8   :  { %v622_v49 = vadd.f32 %v621_v3, %v620_v0  ;;  %v647_v6 = vrot.slane %v633_v5, 4  ;;  %v671_v34 = vmul.f32 %v2261_v30, %v666_v16  ;;  %vm688_vm3 = vmor %vm686_vm1, %vm687_vm0  ;;  %vm677_vm6 = vweird.f32 %v2261_v30  ;;  %v665_v0 = vld [vmem:[#allocation10 + $0x1] ss:$2 sm:$0xf] }
  0xe9   :  { %v682_v32 = vmul.f32 %v2259_v21, %v681_v26  ;;  %vm678_vm13 = vmor %vm676_vm10, %vm677_vm6  ;;  %v740_v53 = vperm.slane %v665_v0, 1 }
  0xea   :  { %v626_v7 = vmul.f32 0.125, %v622_v49  ;;  %v648_v9 = vadd.f32 %v647_v6, %v633_v5  ;;  %v672_v38 = vmul.f32 %v2261_v30, %v671_v34  ;;  %v739_v49 = vperm.slane %v665_v0, 0 }
  0xeb   :  { %v683_v36 = vmul.f32 0.5, %v682_v32  ;;  %v741_v6 = vperm.slane %v665_v0, 2 }
  0xec   :  { %v2542_v10 = vsub.f32 %v596_v47, %v626_v7  ;;  %v649_v12 = vrot.slane %v648_v9, 2  ;;  %v673_v43 = vmul.f32 0.5, %v672_v38  ;;  %v742_v7 = vperm.slane %v665_v0, 3 }
  0xed   :  { %v684_v40 = vsub.f32 1.5, %v683_v36 }
  0xee   :  { %v634_v13 = vmul.f32 %v2542_v10, %v2542_v10  ;;  %v650_v14 = vadd.f32 %v649_v12, %v648_v9  ;;  %v674_v48 = vsub.f32 1.5, %v673_v43 }
  0xef   :  { %v685_v46 = vmul.f32 %v2259_v21, %v684_v40 }
  0xf0   :  { %v653_v15 = vrot.slane %v634_v13, 4  ;;  %v651_v17 = vrot.slane %v650_v14, 1  ;;  %v675_v55 = vmul.f32 %v2261_v30, %v674_v48 }
  0xf1   :  { %v689_v52 = vsel %vm688_vm3, %v2259_v21, %v685_v46 }
  0xf2   :  { %v654_v18 = vadd.f32 %v653_v15, %v634_v13  ;;  %v652_v19 = vadd.f32 %v651_v17, %v650_v14  ;;  %v714_v58 = vrot.slane %v689_v52, 7  ;;  %v679_v62 = vsel %vm678_vm13, %v2261_v30, %v675_v55 }
  0xf4   :  { %v655_v20 = vrot.slane %v654_v18, 2  ;;  %v661_v22 = vmul.f32 0.125, %v652_v19  ;;  %v718_v1 = vsel %vm717_vm11, %v679_v62, %v714_v58 }
  0xf6   :  { %v656_v23 = vadd.f32 %v655_v20, %v654_v18  ;;  %v668_v24 = vadd.f32 1e-05, %v661_v22 }
  0xf8   :  { %v657_v25 = vrot.slane %v656_v23, 1  ;;  %2262 = vrsqrt.f32 %v668_v24  ;;  %vm696_vm4 = vweird.f32 %v668_v24 }
  0xfa   :  { %v658_v27 = vadd.f32 %v657_v25, %v656_v23 }
  0xfc   :  { %v662_v31 = vmul.f32 0.125, %v658_v27 }
  0xfe   :  { %v669_v33 = vadd.f32 1e-05, %v662_v31  ;;  %v2263_v35 = vpop.eup %2262 }
  0xff   :  { %v691_v37 = vmul.f32 %v2263_v35, %v668_v24  ;;  %vm697_vm2 = vweird.f32 %v2263_v35 }
 0x100   :  { %2264 = vrsqrt.f32 %v669_v33  ;;  %vm698_vm7 = vmor %vm696_vm4, %vm697_vm2  ;;  %vm706_vm8 = vweird.f32 %v669_v33 }
 0x101   :  { %v692_v39 = vmul.f32 %v2263_v35, %v691_v37 }
 0x103   :  { %v693_v41 = vmul.f32 0.5, %v692_v39 }
 0x105   :  { %v694_v44 = vsub.f32 1.5, %v693_v41 }
 0x106   :  { %v2265_v42 = vpop.eup %2264 }
 0x107   :  { %v701_v45 = vmul.f32 %v2265_v42, %v669_v33  ;;  %v695_v50 = vmul.f32 %v2263_v35, %v694_v44  ;;  %vm707_vm5 = vweird.f32 %v2265_v42 }
 0x108   :  { %vm708_vm9 = vmor %vm706_vm8, %vm707_vm5 }
 0x109   :  { %v702_v47 = vmul.f32 %v2265_v42, %v701_v45  ;;  %v699_v56 = vsel %vm698_vm7, %v2263_v35, %v695_v50 }
 0x10a   :  { %v715_v60 = vrot.slane %v699_v56, 6 }
 0x10b   :  { %v703_v51 = vmul.f32 0.5, %v702_v47 }
 0x10d   :  { %v704_v54 = vsub.f32 1.5, %v703_v51 }
 0x10f   :  { %v705_v57 = vmul.f32 %v2265_v42, %v704_v54 }
 0x111   :  { %v709_v59 = vsel %vm708_vm9, %v2265_v42, %v705_v57 }
 0x112   :  { %v716_v61 = vrot.slane %v709_v59, 5 }
 0x114   :  { %v720_v3 = vsel %vm719_vm12, %v715_v60, %v716_v61 }
 0x115   :  { %v722_v4 = vsel %vm721_vm14, %v718_v1, %v720_v3 }
 0x116   :  { %v724_v5 = vmul.f32 %v722_v4, %v663_v63 }
 0x118   :  { %v726_v8 = vperm.slane %v724_v5, 0  ;;  %v727_v9 = vperm.slane %v724_v5, 1  ;;  %v728_v11 = vperm.slane %v724_v5, 2  ;;  %v729_v12 = vperm.slane %v724_v5, 3 }
 0x11a   :  { %v734_v13 = vmul.f32 %v726_v8, %v2530_v28  ;;  %v735_v14 = vmul.f32 %v727_v9, %v2532_v29  ;;  %v736_v15 = vmul.f32 %v728_v11, %v2538_v2  ;;  %v737_v16 = vmul.f32 %v729_v12, %v2542_v10 }
 0x11c   :  { %v2551_v17 = vadd.f32 %v739_v49, %v734_v13  ;;  %v2553_v18 = vadd.f32 %v740_v53, %v735_v14  ;;  %v2555_v19 = vadd.f32 %v741_v6, %v736_v15  ;;  %v2557_v20 = vadd.f32 %v742_v7, %v737_v16 }
 0x11e   :  { %v751_v21 = vmax.f32 %v2551_v17, 0.0  ;;  %v752_v22 = vmax.f32 %v2553_v18, 0.0  ;;  %v753_v28 = vmax.f32 %v2555_v19, 0.0  ;;  %v754_v29 = vmax.f32 %v2557_v20, 0.0 }
 0x11f   :  { %2445 = dma.done.wait [#allocation4], 8192 }
 0x120   :  { %2446 = vsyncadd [#allocation4], 4294959104  ;;  %v1841_v2 = vld [vmem:[#allocation2 + $0x70] sm:$0xf]  ;;  %v2184_v10 = vld [vmem:[#allocation2 + $0x74] sm:$0xf0] }
 0x121   :  { %v1905_v23 = vld [vmem:[#allocation2 + $0xf0] sm:$0xf]  ;;  %v1842_v24 = vor.u32 %v2184_v10, %v1841_v2  ;;  %v2200_v25 = vld [vmem:[#allocation2 + $0xf4] sm:$0xf0]  ;;  %v1833_v34 = vld [vmem:[#allocation2 + $0x60] sm:$0xf] }
 0x122   :  { %v1969_v26 = vld [vmem:[#allocation2 + $0x170] sm:$0xf]  ;;  %v2216_v27 = vld [vmem:[#allocation2 + $0x174] sm:$0xf0]  ;;  %v1906_v30 = vor.u32 %v2200_v25, %v1905_v23  ;;  %v2182_v36 = vld [vmem:[#allocation2 + $0x64] sm:$0xf0] }
 0x123   :  { %v1970_v31 = vor.u32 %v2216_v27, %v1969_v26  ;;  %v2033_v32 = vld [vmem:[#allocation2 + $0x1f0] sm:$0xf]  ;;  %v2232_v33 = vld [vmem:[#allocation2 + $0x1f4] sm:$0xf0]  ;;  %1147 = vmatpush.bf16.msra.mxu0 %v1842_v24  ;;  %v1897_v37 = vld [vmem:[#allocation2 + $0xe0] sm:$0xf]  ;;  %v1834_v39 = vor.u32 %v2182_v36, %v1833_v34 }
 0x124   :  { %v2034_v35 = vor.u32 %v2232_v33, %v2033_v32  ;;  %v2198_v38 = vld [vmem:[#allocation2 + $0xe4] sm:$0xf0]  ;;  %1160 = vmatpush.bf16.msra.mxu1 %v1906_v30  ;;  %v1961_v41 = vld [vmem:[#allocation2 + $0x160] sm:$0xf]  ;;  %v1825_v46 = vld [vmem:[#allocation2 + $0x50] sm:$0xf] }
 0x125   :  { %1173 = vmatpush.bf16.msra.mxu2 %v1970_v31  ;;  %v1898_v40 = vor.u32 %v2198_v38, %v1897_v37  ;;  %v2214_v42 = vld [vmem:[#allocation2 + $0x164] sm:$0xf0]  ;;  %v2025_v43 = vld [vmem:[#allocation2 + $0x1e0] sm:$0xf]  ;;  %v2180_v47 = vld [vmem:[#allocation2 + $0x54] sm:$0xf0] }
 0x126   :  { %1186 = vmatpush.bf16.msra.mxu3 %v2034_v35  ;;  %v1962_v44 = vor.u32 %v2214_v42, %v1961_v41  ;;  %v2230_v45 = vld [vmem:[#allocation2 + $0x1e4] sm:$0xf0]  ;;  %v1889_v50 = vld [vmem:[#allocation2 + $0xd0] sm:$0xf]  ;;  %v2196_v51 = vld [vmem:[#allocation2 + $0xd4] sm:$0xf0]  ;;  %v1826_v54 = vor.u32 %v2180_v47, %v1825_v46 }
 0x127   :  { %v2026_v48 = vor.u32 %v2230_v45, %v2025_v43  ;;  %v1953_v52 = vld [vmem:[#allocation2 + $0x150] sm:$0xf]  ;;  %1148 = vmatpush.bf16.msra.mxu0 %v1834_v39  ;;  %v2212_v55 = vld [vmem:[#allocation2 + $0x154] sm:$0xf0]  ;;  %v1890_v58 = vor.u32 %v2196_v51, %v1889_v50  ;;  %v1817_v60 = vld [vmem:[#allocation2 + $0x40] sm:$0xf] }
 0x128   :  { %v2017_v56 = vld [vmem:[#allocation2 + $0x1d0] sm:$0xf]  ;;  %v2228_v57 = vld [vmem:[#allocation2 + $0x1d4] sm:$0xf0]  ;;  %1161 = vmatpush.bf16.msra.mxu1 %v1898_v40  ;;  %v1954_v59 = vor.u32 %v2212_v55, %v1953_v52  ;;  %v2178_v61 = vld [vmem:[#allocation2 + $0x44] sm:$0xf0] }
 0x129   :  { %1174 = vmatpush.bf16.msra.mxu2 %v1962_v44  ;;  %v1881_v62 = vld [vmem:[#allocation2 + $0xc0] sm:$0xf]  ;;  %v2018_v63 = vor.u32 %v2228_v57, %v2017_v56  ;;  %v2194_v0 = vld [vmem:[#allocation2 + $0xc4] sm:$0xf0]  ;;  %v1818_v49 = vor.u32 %v2178_v61, %v1817_v60  ;;  %v1809_v7 = vld [vmem:[#allocation2 + $0x30] sm:$0xf] }
 0x12a   :  { %1187 = vmatpush.bf16.msra.mxu3 %v2026_v48  ;;  %v1945_v1 = vld [vmem:[#allocation2 + $0x140] sm:$0xf]  ;;  %v2210_v3 = vld [vmem:[#allocation2 + $0x144] sm:$0xf0]  ;;  %v1882_v53 = vor.u32 %v2194_v0, %v1881_v62  ;;  %v2176_v8 = vld [vmem:[#allocation2 + $0x34] sm:$0xf0] }
 0x12b   :  { %v2009_v4 = vld [vmem:[#allocation2 + $0x1c0] sm:$0xf]  ;;  %v2226_v5 = vld [vmem:[#allocation2 + $0x1c4] sm:$0xf0]  ;;  %1149 = vmatpush.bf16.msra.mxu0 %v1826_v54  ;;  %v1946_v6 = vor.u32 %v2210_v3, %v1945_v1  ;;  %v1873_v9 = vld [vmem:[#allocation2 + $0xb0] sm:$0xf]  ;;  %v1810_v2 = vor.u32 %v2176_v8, %v1809_v7 }
 0x12c   :  { %1162 = vmatpush.bf16.msra.mxu1 %v1890_v58  ;;  %v2010_v11 = vor.u32 %v2226_v5, %v2009_v4  ;;  %v2192_v12 = vld [vmem:[#allocation2 + $0xb4] sm:$0xf0]  ;;  %v1937_v13 = vld [vmem:[#allocation2 + $0x130] sm:$0xf]  ;;  %v1801_v24 = vld [vmem:[#allocation2 + $0x20] sm:$0xf] }
 0x12d   :  { %1175 = vmatpush.bf16.msra.mxu2 %v1954_v59  ;;  %v2208_v14 = vld [vmem:[#allocation2 + $0x134] sm:$0xf0]  ;;  %v2001_v15 = vld [vmem:[#allocation2 + $0x1b0] sm:$0xf]  ;;  %v1874_v10 = vor.u32 %v2192_v12, %v1873_v9  ;;  %v2174_v25 = vld [vmem:[#allocation2 + $0x24] sm:$0xf0] }
 0x12e   :  { %1188 = vmatpush.bf16.msra.mxu3 %v2018_v63  ;;  %v2224_v16 = vld [vmem:[#allocation2 + $0x1b4] sm:$0xf0]  ;;  %v1938_v23 = vor.u32 %v2208_v14, %v1937_v13  ;;  %v1865_v26 = vld [vmem:[#allocation2 + $0xa0] sm:$0xf]  ;;  %v2190_v30 = vld [vmem:[#allocation2 + $0xa4] sm:$0xf0]  ;;  %v1802_v35 = vor.u32 %v2174_v25, %v1801_v24  ;;  %v2571_v24 = vpack.c.bf16 %v754_v29, %v754_v29 }
 0x12f   :  { %1150 = vmatpush.bf16.msra.mxu0 %v1818_v49  ;;  %v2002_v27 = vor.u32 %v2224_v16, %v2001_v15  ;;  %v1929_v31 = vld [vmem:[#allocation2 + $0x120] sm:$0xf]  ;;  %v2206_v32 = vld [vmem:[#allocation2 + $0x124] sm:$0xf0]  ;;  %v1866_v36 = vor.u32 %v2190_v30, %v1865_v26  ;;  %v1793_v38 = vld [vmem:[#allocation2 + $0x10] sm:$0xf]  ;;  %v2566_v16 = vpack.c.bf16 %v753_v28, %v753_v28  ;;  %v2581_v28 = vpack.c.bf16 %v752_v22, %v752_v22 }
 0x130   :  { %1163 = vmatpush.bf16.msra.mxu1 %v1882_v53  ;;  %v1993_v33 = vld [vmem:[#allocation2 + $0x1a0] sm:$0xf]  ;;  %v2222_v34 = vld [vmem:[#allocation2 + $0x1a4] sm:$0xf0]  ;;  %v1930_v37 = vor.u32 %v2206_v32, %v1929_v31  ;;  %v2172_v39 = vld [vmem:[#allocation2 + $0x14] sm:$0xf0] }
 0x131   :  { %1176 = vmatpush.bf16.msra.mxu2 %v1946_v6  ;;  %v1857_v40 = vld [vmem:[#allocation2 + $0x90] sm:$0xf]  ;;  %v1994_v41 = vor.u32 %v2222_v34, %v1993_v33  ;;  %v2188_v42 = vld [vmem:[#allocation2 + $0x94] sm:$0xf0]  ;;  %v1794_v47 = vor.u32 %v2172_v39, %v1793_v38  ;;  %v1785_v48 = vld [vmem:[#allocation2] sm:$0xf] }
 0x132   :  { %1189 = vmatpush.bf16.msra.mxu3 %v2010_v11  ;;  %v1921_v43 = vld [vmem:[#allocation2 + $0x110] sm:$0xf]  ;;  %v2204_v44 = vld [vmem:[#allocation2 + $0x114] sm:$0xf0]  ;;  %v2170_v50 = vld [vmem:[#allocation2 + $0x4] sm:$0xf0]  ;;  %v1858_v51 = vor.u32 %v2188_v42, %v1857_v40 }
 0x133   :  { %1151 = vmatpush.bf16.msra.mxu0 %v1810_v2  ;;  %v1985_v45 = vld [vmem:[#allocation2 + $0x190] sm:$0xf]  ;;  %v2220_v46 = vld [vmem:[#allocation2 + $0x194] sm:$0xf0]  ;;  %v1922_v52 = vor.u32 %v2204_v44, %v1921_v43  ;;  %v1849_v54 = vld [vmem:[#allocation2 + $0x80] sm:$0xf]  ;;  %v1786_v0 = vor.u32 %v2170_v50, %v1785_v48 }
 0x134   :  { %1164 = vmatpush.bf16.msra.mxu1 %v1874_v10  ;;  %v2186_v55 = vld [vmem:[#allocation2 + $0x84] sm:$0xf0]  ;;  %v1913_v56 = vld [vmem:[#allocation2 + $0x100] sm:$0xf]  ;;  %v1986_v57 = vor.u32 %v2220_v46, %v1985_v45  ;;  %v2183_v61 = vld [vmem:[#allocation2 + $0x74] sm:$0xf] }
 0x135   :  { %1177 = vmatpush.bf16.msra.mxu2 %v1938_v23  ;;  %v2202_v58 = vld [vmem:[#allocation2 + $0x104] sm:$0xf0]  ;;  %v1977_v59 = vld [vmem:[#allocation2 + $0x180] sm:$0xf]  ;;  %v1843_v62 = vld [vmem:[#allocation2 + $0x78] sm:$0xf0]  ;;  %v1850_v5 = vor.u32 %v2186_v55, %v1849_v54 }
 0x136   :  { %1190 = vmatpush.bf16.msra.mxu3 %v2002_v27  ;;  %v2218_v60 = vld [vmem:[#allocation2 + $0x184] sm:$0xf0]  ;;  %v2199_v63 = vld [vmem:[#allocation2 + $0xf4] sm:$0xf]  ;;  %v1907_v1 = vld [vmem:[#allocation2 + $0xf8] sm:$0xf0]  ;;  %v1914_v49 = vor.u32 %v2202_v58, %v1913_v56  ;;  %v1846_v8 = vor.u32 %v2183_v61, %v1843_v62  ;;  %v2576_v27 = vpack.c.bf16 %v751_v21, %v751_v21 }
 0x137   :  { %1152 = vmatpush.bf16.msra.mxu0 %v1802_v35  ;;  %v2215_v3 = vld [vmem:[#allocation2 + $0x174] sm:$0xf]  ;;  %v1971_v4 = vld [vmem:[#allocation2 + $0x178] sm:$0xf0]  ;;  %v1978_v7 = vor.u32 %v2218_v60, %v1977_v59  ;;  %v1910_v9 = vor.u32 %v2199_v63, %v1907_v1  ;;  %v2181_v12 = vld [vmem:[#allocation2 + $0x64] sm:$0xf] }
 0x138   :  { %1165 = vmatpush.bf16.msra.mxu1 %v1866_v36  ;;  %v2231_v53 = vld [vmem:[#allocation2 + $0x1f4] sm:$0xf]  ;;  %v2035_v6 = vld [vmem:[#allocation2 + $0x1f8] sm:$0xf0]  ;;  %v1974_v11 = vor.u32 %v2215_v3, %v1971_v4  ;;  %v1835_v13 = vld [vmem:[#allocation2 + $0x68] sm:$0xf0] }
 0x139   :  { %1178 = vmatpush.bf16.msra.mxu2 %v1930_v37  ;;  %v2197_v14 = vld [vmem:[#allocation2 + $0xe4] sm:$0xf]  ;;  %v2038_v15 = vor.u32 %v2231_v53, %v2035_v6  ;;  %v1899_v2 = vld [vmem:[#allocation2 + $0xe8] sm:$0xf0]  ;;  %v1838_v19 = vor.u32 %v2181_v12, %v1835_v13  ;;  %v2179_v30 = vld [vmem:[#allocation2 + $0x54] sm:$0xf] }
 0x13a   :  { %1191 = vmatpush.bf16.msra.mxu3 %v1994_v41  ;;  %v2213_v10 = vld [vmem:[#allocation2 + $0x164] sm:$0xf]  ;;  %v1963_v23 = vld [vmem:[#allocation2 + $0x168] sm:$0xf0]  ;;  %v1902_v20 = vor.u32 %v2197_v14, %v1899_v2  ;;  %v1827_v31 = vld [vmem:[#allocation2 + $0x58] sm:$0xf0] }
 0x13b   :  { %1153 = vmatpush.bf16.msra.mxu0 %v1794_v47  ;;  %v2229_v25 = vld [vmem:[#allocation2 + $0x1e4] sm:$0xf]  ;;  %v2027_v26 = vld [vmem:[#allocation2 + $0x1e8] sm:$0xf0]  ;;  %v1966_v29 = vor.u32 %v2213_v10, %v1963_v23  ;;  %v2195_v32 = vld [vmem:[#allocation2 + $0xd4] sm:$0xf]  ;;  %v1830_v35 = vor.u32 %v2179_v30, %v1827_v31 }
 0x13c   :  { %1166 = vmatpush.bf16.msra.mxu1 %v1858_v51  ;;  %v2030_v17 = vor.u32 %v2229_v25, %v2027_v26  ;;  %v1891_v21 = vld [vmem:[#allocation2 + $0xd8] sm:$0xf0]  ;;  %v2211_v33 = vld [vmem:[#allocation2 + $0x154] sm:$0xf]  ;;  %v2177_v38 = vld [vmem:[#allocation2 + $0x44] sm:$0xf] }
 0x13d   :  { %1179 = vmatpush.bf16.msra.mxu2 %v1922_v52  ;;  %v1955_v34 = vld [vmem:[#allocation2 + $0x158] sm:$0xf0]  ;;  %v2227_v18 = vld [vmem:[#allocation2 + $0x1d4] sm:$0xf]  ;;  %v1894_v36 = vor.u32 %v2195_v32, %v1891_v21  ;;  %v1819_v39 = vld [vmem:[#allocation2 + $0x48] sm:$0xf0] }
 0x13e   :  { %1192 = vmatpush.bf16.msra.mxu3 %v1986_v57  ;;  %v2019_v22 = vld [vmem:[#allocation2 + $0x1d8] sm:$0xf0]  ;;  %v1958_v37 = vor.u32 %v2211_v33, %v1955_v34  ;;  %v2193_v40 = vld [vmem:[#allocation2 + $0xc4] sm:$0xf]  ;;  %v1883_v42 = vld [vmem:[#allocation2 + $0xc8] sm:$0xf0]  ;;  %v1822_v47 = vor.u32 %v2177_v38, %v1819_v39 }
 0x13f   :  { %1154 = vmatpush.bf16.msra.mxu0 %v1786_v0  ;;  %v2022_v41 = vor.u32 %v2227_v18, %v2019_v22  ;;  %v2209_v43 = vld [vmem:[#allocation2 + $0x144] sm:$0xf]  ;;  %v1947_v44 = vld [vmem:[#allocation2 + $0x148] sm:$0xf0]  ;;  %v1886_v48 = vor.u32 %v2193_v40, %v1883_v42  ;;  %v2175_v51 = vld [vmem:[#allocation2 + $0x34] sm:$0xf] }
 0x140   :  { %1167 = vmatpush.bf16.msra.mxu1 %v1850_v5  ;;  %v2225_v45 = vld [vmem:[#allocation2 + $0x1c4] sm:$0xf]  ;;  %v2011_v46 = vld [vmem:[#allocation2 + $0x1c8] sm:$0xf0]  ;;  %v1950_v50 = vor.u32 %v2209_v43, %v1947_v44  ;;  %v1811_v52 = vld [vmem:[#allocation2 + $0x38] sm:$0xf0] }
 0x141   :  { %1180 = vmatpush.bf16.msra.mxu2 %v1914_v49  ;;  %v2191_v54 = vld [vmem:[#allocation2 + $0xb4] sm:$0xf]  ;;  %v2014_v55 = vor.u32 %v2225_v45, %v2011_v46  ;;  %v1875_v56 = vld [vmem:[#allocation2 + $0xb8] sm:$0xf0]  ;;  %v1814_v61 = vor.u32 %v2175_v51, %v1811_v52  ;;  %v2173_v0 = vld [vmem:[#allocation2 + $0x24] sm:$0xf] }
 0x142   :  { %1193 = vmatpush.bf16.msra.mxu3 %v1978_v7  ;;  %1155 = vmatmul.bf16.vlgmr.msra.gmra.mxu0 %v2576_v27  ;;  %v2207_v57 = vld [vmem:[#allocation2 + $0x134] sm:$0xf]  ;;  %v1939_v58 = vld [vmem:[#allocation2 + $0x138] sm:$0xf0]  ;;  %v1878_v62 = vor.u32 %v2191_v54, %v1875_v56  ;;  %v1803_v1 = vld [vmem:[#allocation2 + $0x28] sm:$0xf0] }
 0x143   :  { %1199 = vmatpush.bf16.msrb.mxu0 %v1846_v8  ;;  %1168 = vmatmul.bf16.vlgmr.msra.gmra.mxu1 %v2581_v28  ;;  %v2223_v59 = vld [vmem:[#allocation2 + $0x1b4] sm:$0xf]  ;;  %v2003_v60 = vld [vmem:[#allocation2 + $0x1b8] sm:$0xf0]  ;;  %v1942_v63 = vor.u32 %v2207_v57, %v1939_v58  ;;  %v2189_v3 = vld [vmem:[#allocation2 + $0xa4] sm:$0xf]  ;;  %v1806_v8 = vor.u32 %v2173_v0, %v1803_v1 }
 0x144   :  { %1212 = vmatpush.bf16.msrb.mxu1 %v1910_v9  ;;  %1181 = vmatmul.bf16.vlgmr.msra.gmra.mxu2 %v2566_v16  ;;  %v2006_v4 = vor.u32 %v2223_v59, %v2003_v60  ;;  %v1867_v5 = vld [vmem:[#allocation2 + $0xa8] sm:$0xf0]  ;;  %v2205_v49 = vld [vmem:[#allocation2 + $0x124] sm:$0xf]  ;;  %v2171_v12 = vld [vmem:[#allocation2 + $0x14] sm:$0xf] }
 0x145   :  { %1225 = vmatpush.bf16.msrb.mxu2 %v1974_v11  ;;  %1194 = vmatmul.bf16.vlgmr.msra.gmra.mxu3 %v2571_v24  ;;  %v1931_v53 = vld [vmem:[#allocation2 + $0x128] sm:$0xf0]  ;;  %v2221_v6 = vld [vmem:[#allocation2 + $0x1a4] sm:$0xf]  ;;  %v1870_v9 = vor.u32 %v2189_v3, %v1867_v5  ;;  %v1795_v13 = vld [vmem:[#allocation2 + $0x18] sm:$0xf0] }
 0x146   :  { %1238 = vmatpush.bf16.msrb.mxu3 %v2038_v15  ;;  %v1995_v7 = vld [vmem:[#allocation2 + $0x1a8] sm:$0xf0]  ;;  %v1934_v11 = vor.u32 %v2205_v49, %v1931_v53  ;;  %v2187_v14 = vld [vmem:[#allocation2 + $0x94] sm:$0xf]  ;;  %v1859_v2 = vld [vmem:[#allocation2 + $0x98] sm:$0xf0] }
 0x147   :  { %1200 = vmatpush.bf16.msrb.mxu0 %v1838_v19  ;;  %v1998_v15 = vor.u32 %v2221_v6, %v1995_v7  ;;  %v2203_v10 = vld [vmem:[#allocation2 + $0x114] sm:$0xf]  ;;  %v1923_v23 = vld [vmem:[#allocation2 + $0x118] sm:$0xf0]  ;;  %v1798_v19 = vor.u32 %v2171_v12, %v1795_v13  ;;  %v2169_v30 = vld [vmem:[#allocation2 + $0x4] sm:$0xf] }
 0x148   :  { %1213 = vmatpush.bf16.msrb.mxu1 %v1902_v20  ;;  %v2219_v25 = vld [vmem:[#allocation2 + $0x194] sm:$0xf]  ;;  %v1987_v26 = vld [vmem:[#allocation2 + $0x198] sm:$0xf0]  ;;  %v1862_v20 = vor.u32 %v2187_v14, %v1859_v2  ;;  %v1787_v31 = vld [vmem:[#allocation2 + $0x8] sm:$0xf0] }
 0x149   :  { %1226 = vmatpush.bf16.msrb.mxu2 %v1966_v29  ;;  %v1926_v29 = vor.u32 %v2203_v10, %v1923_v23  ;;  %v2185_v32 = vld [vmem:[#allocation2 + $0x84] sm:$0xf]  ;;  %v1851_v21 = vld [vmem:[#allocation2 + $0x88] sm:$0xf0] }
 0x14a   :  { %1239 = vmatpush.bf16.msrb.mxu3 %v2030_v17  ;;  %v1990_v17 = vor.u32 %v2219_v25, %v1987_v26  ;;  %v2201_v33 = vld [vmem:[#allocation2 + $0x104] sm:$0xf]  ;;  %v1915_v34 = vld [vmem:[#allocation2 + $0x108] sm:$0xf0] }
 0x14b   :  { %1201 = vmatpush.bf16.msrb.mxu0 %v1830_v35  ;;  %v2217_v18 = vld [vmem:[#allocation2 + $0x184] sm:$0xf]  ;;  %v1979_v22 = vld [vmem:[#allocation2 + $0x188] sm:$0xf0]  ;;  %v1790_v35 = vor.u32 %v2169_v30, %v1787_v31 }
 0x14c   :  { %1214 = vmatpush.bf16.msrb.mxu1 %v1894_v36  ;;  %v1854_v36 = vor.u32 %v2185_v32, %v1851_v21  ;;  %v1982_v38 = vor.u32 %v2217_v18, %v1979_v22 }
 0x14d   :  { %1227 = vmatpush.bf16.msrb.mxu2 %v1958_v37  ;;  %v1918_v37 = vor.u32 %v2201_v33, %v1915_v34 }
 0x14e   :  { %1240 = vmatpush.bf16.msrb.mxu3 %v2022_v41 }
 0x14f   :  { %1202 = vmatpush.bf16.msrb.mxu0 %v1822_v47 }
 0x150   :  { %1215 = vmatpush.bf16.msrb.mxu1 %v1886_v48 }
 0x151   :  { %1228 = vmatpush.bf16.msrb.mxu2 %v1950_v50 }
 0x152   :  { %1241 = vmatpush.bf16.msrb.mxu3 %v2014_v55 }
 0x153   :  { %1203 = vmatpush.bf16.msrb.mxu0 %v1814_v61 }
 0x154   :  { %1216 = vmatpush.bf16.msrb.mxu1 %v1878_v62 }
 0x155   :  { %1229 = vmatpush.bf16.msrb.mxu2 %v1942_v63 }
 0x156   :  { %1242 = vmatpush.bf16.msrb.mxu3 %v2006_v4 }
 0x157   :  { %1204 = vmatpush.bf16.msrb.mxu0 %v1806_v8 }
 0x158   :  { %1217 = vmatpush.bf16.msrb.mxu1 %v1870_v9 }
 0x159   :  { %1230 = vmatpush.bf16.msrb.mxu2 %v1934_v11 }
 0x15a   :  { %1243 = vmatpush.bf16.msrb.mxu3 %v1998_v15 }
 0x15b   :  { %1205 = vmatpush.bf16.msrb.mxu0 %v1798_v19 }
 0x15c   :  { %1218 = vmatpush.bf16.msrb.mxu1 %v1862_v20 }
 0x15d   :  { %1231 = vmatpush.bf16.msrb.mxu2 %v1926_v29 }
 0x15e   :  { %1244 = vmatpush.bf16.msrb.mxu3 %v1990_v17 }
 0x15f   :  { %1206 = vmatpush.bf16.msrb.mxu0 %v1790_v35 }
 0x160   :  { %1219 = vmatpush.bf16.msrb.mxu1 %v1854_v36 }
 0x161   :  { %1232 = vmatpush.bf16.msrb.mxu2 %v1918_v37 }
 0x162   :  { %1245 = vmatpush.bf16.msrb.mxu3 %v1982_v38  ;;  %1207 = vmatmul.bf16.vlgmr.msrb.gmra.mxu0 %v2576_v27 }
 0x163   :  { %1220 = vmatmul.bf16.vlgmr.msrb.gmra.mxu1 %v2581_v28 }
 0x164   :  { %1233 = vmatmul.bf16.vlgmr.msrb.gmra.mxu2 %v2566_v16 }
 0x165   :  { %1246 = vmatmul.bf16.vlgmr.msrb.gmra.mxu3 %v2571_v24 }
 0x1bf   :  { %v1156_v39 = vpop.f32.mrf.mxu0 }
 0x1c0   :  { %v1169_v40 = vpop.f32.mrf.mxu1 }
 0x1c1   :  { %v1170_v41 = vadd.f32 %v1169_v40, %v1156_v39 }
 0x1c7   :  { %v1182_v42 = vpop.f32.mrf.mxu2  ;;  %v1158_v46 = vpop.f32.mrf.mxu0 }
 0x1c8   :  { %v1183_v43 = vadd.f32 %v1182_v42, %v1170_v41  ;;  %v1195_v44 = vpop.f32.mrf.mxu3  ;;  %v1171_v47 = vpop.f32.mrf.mxu1 }
 0x1c9   :  { %v1285_v47 = vld [vmem:[#allocation11 + $0x1] ss:$2 sm:$0x3] }
 0x1ca   :  { %v1196_v45 = vadd.f32 %v1195_v44, %v1183_v43  ;;  %v1283_v44 = vld [vmem:[#allocation11] ss:$2 sm:$0x3] }
 0x1cc   :  { %v1251_v48 = vrot.slane %v1196_v45, 4 }
 0x1ce   :  { %v1252_v50 = vadd.f32 %v1251_v48, %v1196_v45 }
 0x1cf   :  { %v1184_v51 = vpop.f32.mrf.mxu2 }
 0x1d0   :  { %v1253_v52 = vrot.slane %v1252_v50, 2  ;;  %v1197_v27 = vpop.f32.mrf.mxu3 }
 0x1d1   :  { %v1322_v27 = vperm.slane %v1285_v47, 0 }
 0x1d2   :  { %v1254_v54 = vadd.f32 %v1253_v52, %v1252_v50 }
 0x1d4   :  { %v1255_v28 = vrot.slane %v1254_v54, 1 }
 0x1d6   :  { %v1256_v55 = vadd.f32 %v1255_v28, %v1254_v54  ;;  %v1323_v54 = vperm.slane %v1285_v47, 1 }
 0x1d8   :  { %v1263_v16 = vmul.f32 0.125, %v1256_v55 }
 0x1da   :  { %v2591_v56 = vsub.f32 %v1196_v45, %v1263_v16 }
 0x1dc   :  { %v1267_v24 = vmul.f32 %v2591_v56, %v2591_v56 }
 0x1de   :  { %v1269_v59 = vrot.slane %v1267_v24, 4 }
 0x1df   :  { %v1208_v57 = vpop.f32.mrf.mxu0 }
 0x1e0   :  { %v1221_v58 = vpop.f32.mrf.mxu1  ;;  %v1270_v62 = vadd.f32 %v1269_v59, %v1267_v24 }
 0x1e1   :  { %v1222_v60 = vadd.f32 %v1221_v58, %v1208_v57 }
 0x1e2   :  { %v1271_v5 = vrot.slane %v1270_v62, 2 }
 0x1e4   :  { %v1272_v7 = vadd.f32 %v1271_v5, %v1270_v62 }
 0x1e6   :  { %v1273_v12 = vrot.slane %v1272_v7, 1 }
 0x1e7   :  { %v1234_v61 = vpop.f32.mrf.mxu2  ;;  %v1210_v1 = vpop.f32.mrf.mxu0 }
 0x1e8   :  { %v1235_v63 = vadd.f32 %v1234_v61, %v1222_v60  ;;  %v1247_v0 = vpop.f32.mrf.mxu3  ;;  %v1223_v3 = vpop.f32.mrf.mxu1  ;;  %v1274_v15 = vadd.f32 %v1273_v12, %v1272_v7 }
 0x1ea   :  { %v1248_v4 = vadd.f32 %v1247_v0, %v1235_v63  ;;  %v1281_v23 = vmul.f32 0.125, %v1274_v15 }
 0x1ec   :  { %v1257_v49 = vrot.slane %v1248_v4, 4  ;;  %v1286_v19 = vadd.f32 1e-05, %v1281_v23 }
 0x1ee   :  { %v1258_v53 = vadd.f32 %v1257_v49, %v1248_v4  ;;  %2266 = vrsqrt.f32 %v1286_v19  ;;  %vm1294_vm3 = vweird.f32 %v1286_v19 }
 0x1ef   :  { %v1236_v6 = vpop.f32.mrf.mxu2 }
 0x1f0   :  { %v1259_v8 = vrot.slane %v1258_v53, 2  ;;  %v1249_v9 = vpop.f32.mrf.mxu3 }
 0x1f2   :  { %v1260_v11 = vadd.f32 %v1259_v8, %v1258_v53 }
 0x1f4   :  { %v1261_v13 = vrot.slane %v1260_v11, 1  ;;  %v2267_v17 = vpop.eup %2266 }
 0x1f5   :  { %v1289_v34 = vmul.f32 %v2267_v17, %v1286_v19  ;;  %vm1295_vm0 = vweird.f32 %v2267_v17 }
 0x1f6   :  { %v1262_v14 = vadd.f32 %v1261_v13, %v1260_v11  ;;  %vm1296_vm4 = vmor %vm1294_vm3, %vm1295_vm0 }
 0x1f7   :  { %v1290_v18 = vmul.f32 %v2267_v17, %v1289_v34 }
 0x1f8   :  { %v1264_v2 = vmul.f32 0.125, %v1262_v14 }
 0x1f9   :  { %v1291_v35 = vmul.f32 0.5, %v1290_v18 }
 0x1fa   :  { %v1266_v10 = vsub.f32 %v1248_v4, %v1264_v2 }
 0x1fb   :  { %v1292_v38 = vsub.f32 1.5, %v1291_v35 }
 0x1fc   :  { %v1268_v25 = vmul.f32 %v1266_v10, %v1266_v10 }
 0x1fd   :  { %v1293_v41 = vmul.f32 %v2267_v17, %v1292_v38 }
 0x1fe   :  { %v1275_v26 = vrot.slane %v1268_v25, 4 }
 0x1ff   :  { %v1297_v46 = vsel %vm1296_vm4, %v2267_v17, %v1293_v41 }
 0x200   :  { %v1276_v20 = vadd.f32 %v1275_v26, %v1268_v25 }
 0x202   :  { %v1277_v29 = vrot.slane %v1276_v20, 2 }
 0x204   :  { %v1278_v30 = vadd.f32 %v1277_v29, %v1276_v20 }
 0x206   :  { %v1279_v31 = vrot.slane %v1278_v30, 1 }
 0x208   :  { %v1280_v32 = vadd.f32 %v1279_v31, %v1278_v30 }
 0x20a   :  { %v1282_v21 = vmul.f32 0.125, %v1280_v32 }
 0x20c   :  { %v1287_v33 = vadd.f32 1e-05, %v1282_v21 }
 0x20e   :  { %2268 = vrsqrt.f32 %v1287_v33  ;;  %vm1304_vm1 = vweird.f32 %v1287_v33 }
 0x214   :  { %v2269_v22 = vpop.eup %2268 }
 0x215   :  { %v1299_v36 = vmul.f32 %v2269_v22, %v1287_v33  ;;  %vm1305_vm15 = vweird.f32 %v2269_v22 }
 0x216   :  { %vm1306_vm2 = vmor %vm1304_vm1, %vm1305_vm15 }
 0x217   :  { %v1300_v37 = vmul.f32 %v2269_v22, %v1299_v36 }
 0x219   :  { %v1301_v39 = vmul.f32 0.5, %v1300_v37 }
 0x21b   :  { %v1302_v40 = vsub.f32 1.5, %v1301_v39 }
 0x21d   :  { %v1303_v42 = vmul.f32 %v2269_v22, %v1302_v40 }
 0x21f   :  { %v1307_v43 = vsel %vm1306_vm2, %v2269_v22, %v1303_v42 }
 0x220   :  { %v1310_v45 = vrot.slane %v1307_v43, 7 }
 0x222   :  { %v1311_v48 = vsel %vm717_vm11, %v1297_v46, %v1310_v45 }
 0x223   :  { %v1313_v50 = vmul.f32 %v1311_v48, %v1283_v44 }
 0x225   :  { %v1315_v51 = vperm.slane %v1313_v50, 0  ;;  %v1316_v52 = vperm.slane %v1313_v50, 1 }
 0x227   :  { %v1319_v28 = vmul.f32 %v1315_v51, %v2591_v56  ;;  %v1320_v55 = vmul.f32 %v1316_v52, %v1266_v10 }
 0x229   :  { %v1326_v16 = vadd.f32 %v1322_v27, %v1319_v28  ;;  %v1327_v24 = vadd.f32 %v1323_v54, %v1320_v55 }
 0x22b   :  { %v1328_v57 = vmax.f32 %v1326_v16, 0.0  ;;  %v1329_v58 = vmax.f32 %v1327_v24, 0.0 }
 0x22c   :  { %2447 = dma.done.wait [#allocation4 + $0x1], 2048 }
 0x22d   :  { %2448 = vsyncadd [#allocation4 + $0x1], 4294965248  ;;  %v2240_v59 = vld [vmem:[#allocation3 + $0x38] sm:$0xff]  ;;  %v2239_v61 = vld [vmem:[#allocation3 + $0x30] sm:$0xff]  ;;  %v1334_v9 = vpack.c.bf16 %v1328_v57, %v1328_v57  ;;  %v1335_v11 = vpack.c.bf16 %v1329_v58, %v1329_v58  ;;  %s2459_s29 = smov [#allocation13]   ;;  %s1502_s10 = sshll.u32 %s2610_s7, 4  ;;  %s1503_s10 = int_to_ptr.hbm [resolvable:$true] %s1502_s10 }
 0x22e   :  { %v2248_v60 = vld [vmem:[#allocation3 + $0x78] sm:$0xff]  ;;  %1468 = vmatpush.bf16.msra.mxu0 %v2240_v59  ;;  %v2247_v62 = vld [vmem:[#allocation3 + $0x70] sm:$0xff]  ;;  %v2238_v63 = vld [vmem:[#allocation3 + $0x28] sm:$0xff]  ;;  %s1500_s30 = sshll.u32 %s2459_s29, 4  ;;  %s1501_s30 = int_to_ptr.vmem [resolvable:$true] %s1500_s30 }
 0x22f   :  { %1481 = vmatpush.bf16.msra.mxu1 %v2248_v60  ;;  %v2246_v0 = vld [vmem:[#allocation3 + $0x68] sm:$0xff]  ;;  %v2237_v56 = vld [vmem:[#allocation3 + $0x20] sm:$0xff]  ;;  %v2236_v3 = vld [vmem:[#allocation3 + $0x18] sm:$0xff] }
 0x230   :  { %v2245_v1 = vld [vmem:[#allocation3 + $0x60] sm:$0xff]  ;;  %v2244_v4 = vld [vmem:[#allocation3 + $0x58] sm:$0xff]  ;;  %v2235_v5 = vld [vmem:[#allocation3 + $0x10] sm:$0xff] }
 0x231   :  { %v2243_v49 = vld [vmem:[#allocation3 + $0x50] sm:$0xff]  ;;  %v2234_v53 = vld [vmem:[#allocation3 + $0x8] sm:$0xff]  ;;  %v2233_v7 = vld [vmem:[#allocation3] sm:$0xff] }
 0x232   :  { %1469 = vmatpush.bf16.msra.mxu0 %v2239_v61  ;;  %v2242_v6 = vld [vmem:[#allocation3 + $0x48] sm:$0xff]  ;;  %v2241_v8 = vld [vmem:[#allocation3 + $0x40] sm:$0xff] }
 0x233   :  { %1482 = vmatpush.bf16.msra.mxu1 %v2247_v62  ;;  %v2270_v12 = vld [vmem:[%s2607_s4] ss:$0 sm:$0xff] }
 0x236   :  { %1470 = vmatpush.bf16.msra.mxu0 %v2238_v63 }
 0x237   :  { %1483 = vmatpush.bf16.msra.mxu1 %v2246_v0 }
 0x23a   :  { %1471 = vmatpush.bf16.msra.mxu0 %v2237_v56 }
 0x23b   :  { %1484 = vmatpush.bf16.msra.mxu1 %v2245_v1 }
 0x23e   :  { %1472 = vmatpush.bf16.msra.mxu0 %v2236_v3 }
 0x23f   :  { %1485 = vmatpush.bf16.msra.mxu1 %v2244_v4 }
 0x242   :  { %1473 = vmatpush.bf16.msra.mxu0 %v2235_v5 }
 0x243   :  { %1486 = vmatpush.bf16.msra.mxu1 %v2243_v49 }
 0x246   :  { %1474 = vmatpush.bf16.msra.mxu0 %v2234_v53 }
 0x247   :  { %1487 = vmatpush.bf16.msra.mxu1 %v2242_v6 }
 0x24a   :  { %1475 = vmatpush.bf16.msra.mxu0 %v2233_v7 }
 0x24b   :  { %1488 = vmatpush.bf16.msra.mxu1 %v2241_v8 }
 0x24d   :  { %1476 = vmatmul.bf16.vlgmr.msra.gmra.mxu0 %v1334_v9 }
 0x24e   :  { %1489 = vmatmul.bf16.vlgmr.msra.gmra.mxu1 %v1335_v11 }
 0x2ca   :  { %v1477_v13 = vpop.f32.mrf.mxu0 }
 0x2cb   :  { %v1490_v14 = vpop.f32.mrf.mxu1  ;;  %v1478_v15 = vadd.f32 %v2270_v12, %v1477_v13 }
 0x2cd   :  { %v1491_v2 = vadd.f32 %v1490_v14, %v1478_v15 }
 0x2cf   :  { %1494 = vst [vmem:[#allocation13] sm:$0xff] %v1491_v2 }
 0x2d0   :  { %1505 = dma.vmem_to_hbm [thread:$0]  %s1501_s30, 128, %s1503_s10, [#allocation7]  }
 0x2d2   :  { %v1479_v10 = vpop.f32.mrf.mxu0 }
 0x2d3   :  { %v1492_v23 = vpop.f32.mrf.mxu1 }
 0x2d4   :  { %2449 = dma.done.wait [#allocation7], 128  }
 0x2d5   :  { %2450 = vsyncadd [#allocation7], 4294967168 }
 0x2d6   :  { %1510 = vsyncpa [#allocation6], 1 }
 0x2d7   :  { %1511 = vsyncpa [#allocation9], 1 }
 0x2d8   :  { %1512 = vsyncpa [#allocation12], 1 }
 0x2d9   :  { %1513 = vsyncpa [#allocation7], 1 }
 0x2da   :  { %1514 = vsyncmov [#allocation4] }
 0x2dd   :  { %s1515_s4 = vpop.sfrf %1514 }
 0x2de   :  { %p2103_p0 = scmp.ne.s32.totalorder %s1515_s4, 0 }
 0x2e0   :  { %1519 = shalt.err (%p2103_p0)  }
 0x2e1   :  { %1521 = vsyncmov [#allocation4 + $0x1] }
 0x2e4   :  { %s1522_s7 = vpop.sfrf %1521 }
 0x2e5   :  { %p2104_p1 = scmp.ne.s32.totalorder %s1522_s7, 0 }
 0x2e7   :  { %1526 = shalt.err (%p2104_p1)  }

</bundles_post_ra>
